<compile_context>
chip_gen: v7x
topology: tpu7x:2x2x1
jax: 0.10.0
libtpu: 0.0.40
codegen_flags: <defaults>
</compile_context>

<pallas_src>
import functools

import numpy as np
import jax
import jax.numpy as jnp
from jax.experimental import pallas as pl
from jax.experimental.pallas import tpu as pltpu

_EPS = 1e-5  # nn.BatchNorm2d default eps


def _round_up(x, m):
    return ((x + m - 1) // m) * m


def _vmem_limit_bytes():
    # Per-generation scoped-VMEM budget: ~3/4 of physical, capped at 96 MiB.
    # v7x (64 MiB/TC) -> 48 MiB; v5e/v6e (128 MiB) -> 96 MiB.
    try:
        cap = int(pltpu.get_tpu_info().vmem_capacity_bytes)
    except Exception:  # pragma: no cover - conservative fallback
        cap = 128 * 1024 * 1024
    return int(min(cap * 3 // 4, 96 * 1024 * 1024))


# ----------------------------------------------------------------------------
# Pass A: per-image conv (9 shifted matmuls) -> masked per-channel sum / sumsq
# accumulated across images; finalize BN scale/shift at the last grid step.
# ----------------------------------------------------------------------------
def _conv_stats_kernel(x_ref, w_ref, m_ref, g_ref, b_ref,
                       scale_ref, shift_ref, sum_ref, ssq_ref, *,
                       shifts, l_out, inv_count, eps):
    n = pl.program_id(0)

    @pl.when(n == 0)
    def _init():
        sum_ref[...] = jnp.zeros_like(sum_ref)
        ssq_ref[...] = jnp.zeros_like(ssq_ref)

    # 3x3 dilated conv for this image: 9 accumulated bf16 MXU matmuls over
    # statically lane-shifted views of the padded, row-flattened input.
    acc = jnp.dot(w_ref[0], x_ref[:, pl.ds(shifts[0], l_out)],
                  preferred_element_type=jnp.float32)
    for k in range(1, 9):
        acc += jnp.dot(w_ref[k], x_ref[:, pl.ds(shifts[k], l_out)],
                       preferred_element_type=jnp.float32)

    # Exclude wrap-around / tail columns of the padded raster from the stats.
    # Statistics are accumulated in f32 from the f32 MXU accumulator.
    ym = acc * m_ref[...]
    sum_ref[...] += jnp.sum(ym, axis=1, keepdims=True)
    ssq_ref[...] += jnp.sum(ym * ym, axis=1, keepdims=True)

    @pl.when(n == pl.num_programs(0) - 1)
    def _finalize():
        mean = sum_ref[...] * inv_count
        # One-pass E[y^2]-E[y]^2 in f32 (documented precision choice).
        var = ssq_ref[...] * inv_count - mean * mean
        inv = jax.lax.rsqrt(var + eps)
        s = g_ref[...] * inv
        scale_ref[...] = s
        shift_ref[...] = b_ref[...] - mean * s


# ----------------------------------------------------------------------------
# Pass B: recompute the conv (MXU slack is free at mem-bound), apply the
# per-channel affine + ReLU, store lane-dense in (N, Cout, Lout) order.
# ----------------------------------------------------------------------------
def _conv_bn_relu_kernel(x_ref, w_ref, scale_ref, shift_ref, o_ref, *,
                         shifts, l_out):
    acc = jnp.dot(w_ref[0], x_ref[:, pl.ds(shifts[0], l_out)],
                  preferred_element_type=jnp.float32)
    for k in range(1, 9):
        acc += jnp.dot(w_ref[k], x_ref[:, pl.ds(shifts[k], l_out)],
                       preferred_element_type=jnp.float32)
    o_ref[...] = jnp.maximum(acc * scale_ref[...] + shift_ref[...],
                             0.0).astype(o_ref.dtype)


def rebnconv_forward(x, weight, gamma, beta, *, dilation=1):
    """REBNCONV forward (training-mode BatchNorm, PyTorch default).

    x:      (N, Cin, H, W)    float32 (NCHW)
    weight: (Cout, Cin, 3, 3) float32 (PyTorch Conv2d layout)
    gamma, beta: (Cout,)      float32 (BatchNorm2d affine)
    Conv2d bias is omitted: it is cancelled exactly by the BN mean subtraction.
    Returns (N, Cout, H, W) float32.
    """
    N, Cin, H, W = x.shape
    Cout = weight.shape[0]
    d = int(dilation)
    Hp, Wp = H + 2 * d, W + 2 * d
    HWp = H * Wp                       # valid output span in padded raster
    Lout = _round_up(HWp, 128)         # lane-dense output columns per image
    shift_max = 2 * d * Wp + 2 * d     # largest tap offset
    Lp = shift_max + Lout              # input columns needed by the last tap
    Cin_p = _round_up(Cin, 8)

    # tap k = ky*3 + kx  ->  flat shift into the padded raster
    shifts = tuple(ky * d * Wp + kx * d for ky in range(3) for kx in range(3))

    # ---- glue: single spatial zero-pad + row-flatten (NO HBM im2col) -------
    xp = jnp.pad(x, ((0, 0), (0, Cin_p - Cin), (d, d), (d, d)))
    xf = xp.reshape(N, Cin_p, Hp * Wp)
    xf = jnp.pad(xf, ((0, 0), (0, 0), (0, Lp - Hp * Wp))).astype(jnp.bfloat16)
    # TODO(synk): for very large feature maps, split each image into row-tiles
    # with a 2*d-row halo (pl.Element offsets or manual DMA) so the per-step
    # block fits v7x's 64 MiB VMEM; per-image blocks are fine at these shapes.

    # weights as (9, Cout, Cin_p), tap-major (ky, kx); bf16 MXU operands
    w9 = jnp.transpose(weight, (2, 3, 0, 1)).reshape(9, Cout, Cin)
    w9 = jnp.pad(w9, ((0, 0), (0, 0), (0, Cin_p - Cin))).astype(jnp.bfloat16)

    g2 = gamma.reshape(Cout, 1).astype(jnp.float32)
    b2 = beta.reshape(Cout, 1).astype(jnp.float32)

    # 0/1 column-validity mask over the padded raster (built once in glue so
    # the kernel needs no integer mod).
    col = jnp.arange(Lout, dtype=jnp.int32)
    mask = (((col % Wp) < W) & (col < HWp)).astype(jnp.float32).reshape(1, Lout)

    vmem_limit = _vmem_limit_bytes()
    flops = 2 * N * Cout * Cin_p * Lout * 9
    bytes_in = N * Cin_p * Lp * 2 + 9 * Cout * Cin_p * 2

    # -------------------- pass A: batch statistics --------------------------
    # TODO(synk): on v7x, add a leading size-2 "parallel" axis with per-core
    # partial sums to use both TensorCores for this reduction pass.
    kern_a = functools.partial(
        _conv_stats_kernel, shifts=shifts, l_out=Lout,
        inv_count=1.0 / float(N * H * W), eps=_EPS)

    scale, shift = pl.pallas_call(
        kern_a,
        grid=(N,),
        in_specs=[
            pl.BlockSpec((None, Cin_p, Lp), lambda n: (n, 0, 0)),
            pl.BlockSpec((9, Cout, Cin_p), lambda n: (0, 0, 0)),
            pl.BlockSpec((1, Lout), lambda n: (0, 0)),
            pl.BlockSpec((Cout, 1), lambda n: (0, 0)),
            pl.BlockSpec((Cout, 1), lambda n: (0, 0)),
        ],
        out_specs=[
            pl.BlockSpec((Cout, 1), lambda n: (0, 0)),
            pl.BlockSpec((Cout, 1), lambda n: (0, 0)),
        ],
        out_shape=[jax.ShapeDtypeStruct((Cout, 1), jnp.float32),
                   jax.ShapeDtypeStruct((Cout, 1), jnp.float32)],
        scratch_shapes=[pltpu.VMEM((Cout, 1), jnp.float32),
                        pltpu.VMEM((Cout, 1), jnp.float32)],
        compiler_params=pltpu.CompilerParams(
            dimension_semantics=("arbitrary",),      # stats reduction axis
            vmem_limit_bytes=vmem_limit),
        cost_estimate=pl.CostEstimate(
            flops=flops, transcendentals=Cout,
            bytes_accessed=bytes_in + 2 * Cout * 4),
    )(xf, w9, mask, g2, b2)

    # -------------------- pass B: conv + BN + ReLU, final layout ------------
    out_full = pl.pallas_call(
        functools.partial(_conv_bn_relu_kernel, shifts=shifts, l_out=Lout),
        grid=(N,),
        in_specs=[
            pl.BlockSpec((None, Cin_p, Lp), lambda n: (n, 0, 0)),
            pl.BlockSpec((9, Cout, Cin_p), lambda n: (0, 0, 0)),
            pl.BlockSpec((Cout, 1), lambda n: (0, 0)),
            pl.BlockSpec((Cout, 1), lambda n: (0, 0)),
        ],
        out_specs=pl.BlockSpec((None, Cout, Lout), lambda n: (n, 0, 0)),
        out_shape=jax.ShapeDtypeStruct((N, Cout, Lout), jnp.float32),
        compiler_params=pltpu.CompilerParams(
            dimension_semantics=("parallel",),       # megacore-shardable
            vmem_limit_bytes=vmem_limit),
        cost_estimate=pl.CostEstimate(
            flops=flops, transcendentals=0,
            bytes_accessed=bytes_in + N * Cout * Lout * 4),
    )(xf, w9, scale, shift)

    # Already in (N, Cout, ...) order; only a cheap slice/reshape remains
    # (drops the 2*d wrap columns per row) — no transpose pass.
    out = out_full[:, :, :HWp].reshape(N, Cout, H, Wp)[:, :, :, :W]
    return out


# ----------------------------------------------------------------------------
# Pure-JAX reference (includes the conv bias; BN mean subtraction cancels it).
# ----------------------------------------------------------------------------
def rebnconv_reference(x, weight, bias, gamma, beta, *, dilation=1):
    y = jax.lax.conv_general_dilated(
        x, weight, window_strides=(1, 1),
        padding=[(dilation, dilation), (dilation, dilation)],
        rhs_dilation=(dilation, dilation),
        dimension_numbers=("NCHW", "OIHW", "NCHW"))
    y = y + bias.reshape(1, -1, 1, 1)
    mean = jnp.mean(y, axis=(0, 2, 3), keepdims=True)
    var = jnp.mean((y - mean) ** 2, axis=(0, 2, 3), keepdims=True)
    yn = (y - mean) * jax.lax.rsqrt(var + _EPS)
    return jnp.maximum(yn * gamma.reshape(1, -1, 1, 1)
                       + beta.reshape(1, -1, 1, 1), 0.0)


@functools.partial(jax.jit, static_argnames=("dilation",))
def _fwd(x, weight, gamma, beta, *, dilation):
    return rebnconv_forward(x, weight, gamma, beta, dilation=dilation)


if __name__ == "__main__":
    key = jax.random.PRNGKey(0)
    kx, kw, kb, kg, kbe = jax.random.split(key, 5)

    N, Cin, H, W = 2, 4, 16, 16
    Cout = 8

    x = jax.random.normal(kx, (N, Cin, H, W), jnp.float32)
    weight = jax.random.normal(kw, (Cout, Cin, 3, 3), jnp.float32) * 0.1
    bias = jax.random.normal(kb, (Cout,), jnp.float32) * 0.1   # cancelled by BN
    gamma = 1.0 + 0.1 * jax.random.normal(kg, (Cout,), jnp.float32)
    beta = 0.1 * jax.random.normal(kbe, (Cout,), jnp.float32)

    for dil in (1, 2):
        out = _fwd(x, weight, gamma, beta, dilation=dil)
        jax.block_until_ready(out)
        assert out.shape == (N, Cout, H, W)
        ref = rebnconv_reference(x, weight, bias, gamma, beta, dilation=dil)
        err = float(jnp.max(jnp.abs(out - ref)))
        assert np.isfinite(err) and err < 1e-1, \
            f"max abs err {err} at dilation={dil}"

    print("KERNEL_OK")
</pallas_src>

<mosaic_0001>
module attributes {stable_mosaic.version = 11 : i64} {
  func.func @_conv_stats_kernel(%arg0: i32, %arg1: memref<1x8x422xbf16, #tpu.memory_space<vmem>>, %arg2: memref<9x8x8xbf16, #tpu.memory_space<vmem>>, %arg3: memref<1x384xf32, #tpu.memory_space<vmem>>, %arg4: memref<8x1xf32, #tpu.memory_space<vmem>>, %arg5: memref<8x1xf32, #tpu.memory_space<vmem>>, %arg6: memref<8x1xf32, #tpu.memory_space<vmem>>, %arg7: memref<8x1xf32, #tpu.memory_space<vmem>>, %arg8: memref<8x1xf32, #tpu.memory_space<vmem>>, %arg9: memref<8x1xf32, #tpu.memory_space<vmem>>) attributes {dimension_semantics = [#tpu.dimension_semantics<arbitrary>], iteration_bounds = array<i64: 2>, scalar_prefetch = 0 : i64, scratch_operands = 2 : i64, tpu.core_type = #tpu.core_type<tc>, window_params = [{transform_indices = @transform_0, window_bounds = array<i64: 1, 8, 422>}, {pipeline_mode = #tpu.pipeline_mode<synchronous>, transform_indices = @transform_1, window_bounds = array<i64: 9, 8, 8>}, {pipeline_mode = #tpu.pipeline_mode<synchronous>, transform_indices = @transform_2, window_bounds = array<i64: 1, 384>}, {pipeline_mode = #tpu.pipeline_mode<synchronous>, transform_indices = @transform_3, window_bounds = array<i64: 8, 1>}, {pipeline_mode = #tpu.pipeline_mode<synchronous>, transform_indices = @transform_4, window_bounds = array<i64: 8, 1>}, {pipeline_mode = #tpu.pipeline_mode<synchronous>, transform_indices = @transform_5, window_bounds = array<i64: 8, 1>}, {pipeline_mode = #tpu.pipeline_mode<synchronous>, transform_indices = @transform_6, window_bounds = array<i64: 8, 1>}]} {
    %c0_i32 = arith.constant 0 : i32
    %0 = arith.cmpi eq, %arg0, %c0_i32 : i32
    %1 = arith.extui %0 : i1 to i32
    %c0_i32_0 = arith.constant 0 : i32
    %2 = arith.cmpi ne, %1, %c0_i32_0 : i32
    scf.if %2 {
      %cst_61 = arith.constant 0.000000e+00 : f32
      %73 = vector.broadcast %cst_61 : f32 to vector<8x1xf32>
      %c0_62 = arith.constant 0 : index
      %c0_63 = arith.constant 0 : index
      %74 = vector.load %arg8[%c0_62, %c0_63] : memref<8x1xf32, #tpu.memory_space<vmem>>, vector<8x1xf32>
      tpu.vector_store %arg8[%c0_62, %c0_63], %73 {strides = array<i32>} : memref<8x1xf32, #tpu.memory_space<vmem>>, vector<8x1xf32>,
      %cst_64 = arith.constant 0.000000e+00 : f32
      %75 = vector.broadcast %cst_64 : f32 to vector<8x1xf32>
      %c0_65 = arith.constant 0 : index
      %c0_66 = arith.constant 0 : index
      %76 = vector.load %arg9[%c0_65, %c0_66] : memref<8x1xf32, #tpu.memory_space<vmem>>, vector<8x1xf32>
      tpu.vector_store %arg9[%c0_65, %c0_66], %75 {strides = array<i32>} : memref<8x1xf32, #tpu.memory_space<vmem>>, vector<8x1xf32>,
    } else {
    }
    %c0 = arith.constant 0 : index
    %c0_1 = arith.constant 0 : index
    %c0_2 = arith.constant 0 : index
    %3 = vector.load %arg2[%c0, %c0_1, %c0_2] : memref<9x8x8xbf16, #tpu.memory_space<vmem>>, vector<1x8x8xbf16>
    %4 = vector.shape_cast %3 : vector<1x8x8xbf16> to vector<8x8xbf16>
    %c0_3 = arith.constant 0 : index
    %c0_4 = arith.constant 0 : index
    %c0_5 = arith.constant 0 : index
    %5 = vector.load %arg1[%c0_3, %c0_4, %c0_5] : memref<1x8x422xbf16, #tpu.memory_space<vmem>>, vector<1x8x384xbf16>
    %6 = vector.shape_cast %5 : vector<1x8x384xbf16> to vector<8x384xbf16>
    %cst = arith.constant dense<0.000000e+00> : vector<8x384xf32>
    %7 = tpu.matmul %4, %6, %cst {dimension_numbers = #tpu.dot_dimension_numbers<[1], [0], [0], [1], [0, 0, 1, 1], [], []>} : vector<8x8xbf16>, vector<8x384xbf16>, vector<8x384xf32> -> vector<8x384xf32>
    %c1 = arith.constant 1 : index
    %c0_6 = arith.constant 0 : index
    %c0_7 = arith.constant 0 : index
    %8 = vector.load %arg2[%c1, %c0_6, %c0_7] : memref<9x8x8xbf16, #tpu.memory_space<vmem>>, vector<1x8x8xbf16>
    %9 = vector.shape_cast %8 : vector<1x8x8xbf16> to vector<8x8xbf16>
    %c0_8 = arith.constant 0 : index
    %c0_9 = arith.constant 0 : index
    %c1_10 = arith.constant 1 : index
    %10 = vector.load %arg1[%c0_8, %c0_9, %c1_10] : memref<1x8x422xbf16, #tpu.memory_space<vmem>>, vector<1x8x384xbf16>
    %11 = vector.shape_cast %10 : vector<1x8x384xbf16> to vector<8x384xbf16>
    %cst_11 = arith.constant dense<0.000000e+00> : vector<8x384xf32>
    %12 = tpu.matmul %9, %11, %cst_11 {dimension_numbers = #tpu.dot_dimension_numbers<[1], [0], [0], [1], [0, 0, 1, 1], [], []>} : vector<8x8xbf16>, vector<8x384xbf16>, vector<8x384xf32> -> vector<8x384xf32>
    %13 = arith.addf %7, %12 : vector<8x384xf32>
    %c2 = arith.constant 2 : index
    %c0_12 = arith.constant 0 : index
    %c0_13 = arith.constant 0 : index
    %14 = vector.load %arg2[%c2, %c0_12, %c0_13] : memref<9x8x8xbf16, #tpu.memory_space<vmem>>, vector<1x8x8xbf16>
    %15 = vector.shape_cast %14 : vector<1x8x8xbf16> to vector<8x8xbf16>
    %c0_14 = arith.constant 0 : index
    %c0_15 = arith.constant 0 : index
    %c2_16 = arith.constant 2 : index
    %16 = vector.load %arg1[%c0_14, %c0_15, %c2_16] : memref<1x8x422xbf16, #tpu.memory_space<vmem>>, vector<1x8x384xbf16>
    %17 = vector.shape_cast %16 : vector<1x8x384xbf16> to vector<8x384xbf16>
    %cst_17 = arith.constant dense<0.000000e+00> : vector<8x384xf32>
    %18 = tpu.matmul %15, %17, %cst_17 {dimension_numbers = #tpu.dot_dimension_numbers<[1], [0], [0], [1], [0, 0, 1, 1], [], []>} : vector<8x8xbf16>, vector<8x384xbf16>, vector<8x384xf32> -> vector<8x384xf32>
    %19 = arith.addf %13, %18 : vector<8x384xf32>
    %c3 = arith.constant 3 : index
    %c0_18 = arith.constant 0 : index
    %c0_19 = arith.constant 0 : index
    %20 = vector.load %arg2[%c3, %c0_18, %c0_19] : memref<9x8x8xbf16, #tpu.memory_space<vmem>>, vector<1x8x8xbf16>
    %21 = vector.shape_cast %20 : vector<1x8x8xbf16> to vector<8x8xbf16>
    %c0_20 = arith.constant 0 : index
    %c0_21 = arith.constant 0 : index
    %c18 = arith.constant 18 : index
    %22 = vector.load %arg1[%c0_20, %c0_21, %c18] : memref<1x8x422xbf16, #tpu.memory_space<vmem>>, vector<1x8x384xbf16>
    %23 = vector.shape_cast %22 : vector<1x8x384xbf16> to vector<8x384xbf16>
    %cst_22 = arith.constant dense<0.000000e+00> : vector<8x384xf32>
    %24 = tpu.matmul %21, %23, %cst_22 {dimension_numbers = #tpu.dot_dimension_numbers<[1], [0], [0], [1], [0, 0, 1, 1], [], []>} : vector<8x8xbf16>, vector<8x384xbf16>, vector<8x384xf32> -> vector<8x384xf32>
    %25 = arith.addf %19, %24 : vector<8x384xf32>
    %c4 = arith.constant 4 : index
    %c0_23 = arith.constant 0 : index
    %c0_24 = arith.constant 0 : index
    %26 = vector.load %arg2[%c4, %c0_23, %c0_24] : memref<9x8x8xbf16, #tpu.memory_space<vmem>>, vector<1x8x8xbf16>
    %27 = vector.shape_cast %26 : vector<1x8x8xbf16> to vector<8x8xbf16>
    %c0_25 = arith.constant 0 : index
    %c0_26 = arith.constant 0 : index
    %c19 = arith.constant 19 : index
    %28 = vector.load %arg1[%c0_25, %c0_26, %c19] : memref<1x8x422xbf16, #tpu.memory_space<vmem>>, vector<1x8x384xbf16>
    %29 = vector.shape_cast %28 : vector<1x8x384xbf16> to vector<8x384xbf16>
    %cst_27 = arith.constant dense<0.000000e+00> : vector<8x384xf32>
    %30 = tpu.matmul %27, %29, %cst_27 {dimension_numbers = #tpu.dot_dimension_numbers<[1], [0], [0], [1], [0, 0, 1, 1], [], []>} : vector<8x8xbf16>, vector<8x384xbf16>, vector<8x384xf32> -> vector<8x384xf32>
    %31 = arith.addf %25, %30 : vector<8x384xf32>
    %c5 = arith.constant 5 : index
    %c0_28 = arith.constant 0 : index
    %c0_29 = arith.constant 0 : index
    %32 = vector.load %arg2[%c5, %c0_28, %c0_29] : memref<9x8x8xbf16, #tpu.memory_space<vmem>>, vector<1x8x8xbf16>
    %33 = vector.shape_cast %32 : vector<1x8x8xbf16> to vector<8x8xbf16>
    %c0_30 = arith.constant 0 : index
    %c0_31 = arith.constant 0 : index
    %c20 = arith.constant 20 : index
    %34 = vector.load %arg1[%c0_30, %c0_31, %c20] : memref<1x8x422xbf16, #tpu.memory_space<vmem>>, vector<1x8x384xbf16>
    %35 = vector.shape_cast %34 : vector<1x8x384xbf16> to vector<8x384xbf16>
    %cst_32 = arith.constant dense<0.000000e+00> : vector<8x384xf32>
    %36 = tpu.matmul %33, %35, %cst_32 {dimension_numbers = #tpu.dot_dimension_numbers<[1], [0], [0], [1], [0, 0, 1, 1], [], []>} : vector<8x8xbf16>, vector<8x384xbf16>, vector<8x384xf32> -> vector<8x384xf32>
    %37 = arith.addf %31, %36 : vector<8x384xf32>
    %c6 = arith.constant 6 : index
    %c0_33 = arith.constant 0 : index
    %c0_34 = arith.constant 0 : index
    %38 = vector.load %arg2[%c6, %c0_33, %c0_34] : memref<9x8x8xbf16, #tpu.memory_space<vmem>>, vector<1x8x8xbf16>
    %39 = vector.shape_cast %38 : vector<1x8x8xbf16> to vector<8x8xbf16>
    %c0_35 = arith.constant 0 : index
    %c0_36 = arith.constant 0 : index
    %c36 = arith.constant 36 : index
    %40 = vector.load %arg1[%c0_35, %c0_36, %c36] : memref<1x8x422xbf16, #tpu.memory_space<vmem>>, vector<1x8x384xbf16>
    %41 = vector.shape_cast %40 : vector<1x8x384xbf16> to vector<8x384xbf16>
    %cst_37 = arith.constant dense<0.000000e+00> : vector<8x384xf32>
    %42 = tpu.matmul %39, %41, %cst_37 {dimension_numbers = #tpu.dot_dimension_numbers<[1], [0], [0], [1], [0, 0, 1, 1], [], []>} : vector<8x8xbf16>, vector<8x384xbf16>, vector<8x384xf32> -> vector<8x384xf32>
    %43 = arith.addf %37, %42 : vector<8x384xf32>
    %c7 = arith.constant 7 : index
    %c0_38 = arith.constant 0 : index
    %c0_39 = arith.constant 0 : index
    %44 = vector.load %arg2[%c7, %c0_38, %c0_39] : memref<9x8x8xbf16, #tpu.memory_space<vmem>>, vector<1x8x8xbf16>
    %45 = vector.shape_cast %44 : vector<1x8x8xbf16> to vector<8x8xbf16>
    %c0_40 = arith.constant 0 : index
    %c0_41 = arith.constant 0 : index
    %c37 = arith.constant 37 : index
    %46 = vector.load %arg1[%c0_40, %c0_41, %c37] : memref<1x8x422xbf16, #tpu.memory_space<vmem>>, vector<1x8x384xbf16>
    %47 = vector.shape_cast %46 : vector<1x8x384xbf16> to vector<8x384xbf16>
    %cst_42 = arith.constant dense<0.000000e+00> : vector<8x384xf32>
    %48 = tpu.matmul %45, %47, %cst_42 {dimension_numbers = #tpu.dot_dimension_numbers<[1], [0], [0], [1], [0, 0, 1, 1], [], []>} : vector<8x8xbf16>, vector<8x384xbf16>, vector<8x384xf32> -> vector<8x384xf32>
    %49 = arith.addf %43, %48 : vector<8x384xf32>
    %c8 = arith.constant 8 : index
    %c0_43 = arith.constant 0 : index
    %c0_44 = arith.constant 0 : index
    %50 = vector.load %arg2[%c8, %c0_43, %c0_44] : memref<9x8x8xbf16, #tpu.memory_space<vmem>>, vector<1x8x8xbf16>
    %51 = vector.shape_cast %50 : vector<1x8x8xbf16> to vector<8x8xbf16>
    %c0_45 = arith.constant 0 : index
    %c0_46 = arith.constant 0 : index
    %c38 = arith.constant 38 : index
    %52 = vector.load %arg1[%c0_45, %c0_46, %c38] : memref<1x8x422xbf16, #tpu.memory_space<vmem>>, vector<1x8x384xbf16>
    %53 = vector.shape_cast %52 : vector<1x8x384xbf16> to vector<8x384xbf16>
    %cst_47 = arith.constant dense<0.000000e+00> : vector<8x384xf32>
    %54 = tpu.matmul %51, %53, %cst_47 {dimension_numbers = #tpu.dot_dimension_numbers<[1], [0], [0], [1], [0, 0, 1, 1], [], []>} : vector<8x8xbf16>, vector<8x384xbf16>, vector<8x384xf32> -> vector<8x384xf32>
    %55 = arith.addf %49, %54 : vector<8x384xf32>
    %c0_48 = arith.constant 0 : index
    %c0_49 = arith.constant 0 : index
    %56 = vector.load %arg3[%c0_48, %c0_49] : memref<1x384xf32, #tpu.memory_space<vmem>>, vector<1x384xf32>
    %57 = vector.broadcast %56 : vector<1x384xf32> to vector<8x384xf32>
    %58 = arith.mulf %55, %57 : vector<8x384xf32>
    %c0_50 = arith.constant 0 : index
    %c0_51 = arith.constant 0 : index
    %59 = vector.load %arg8[%c0_50, %c0_51] : memref<8x1xf32, #tpu.memory_space<vmem>>, vector<8x1xf32>
    %cst_52 = arith.constant dense<0.000000e+00> : vector<8xf32>
    %60 = vector.multi_reduction <add>, %58, %cst_52 [1] : vector<8x384xf32> to vector<8xf32>
    %61 = vector.shape_cast %60 : vector<8xf32> to vector<8x1xf32>
    %62 = arith.addf %59, %61 : vector<8x1xf32>
    %c0_53 = arith.constant 0 : index
    %c0_54 = arith.constant 0 : index
    %63 = vector.load %arg8[%c0_53, %c0_54] : memref<8x1xf32, #tpu.memory_space<vmem>>, vector<8x1xf32>
    tpu.vector_store %arg8[%c0_53, %c0_54], %62 {strides = array<i32>} : memref<8x1xf32, #tpu.memory_space<vmem>>, vector<8x1xf32>,
    %c0_55 = arith.constant 0 : index
    %c0_56 = arith.constant 0 : index
    %64 = vector.load %arg9[%c0_55, %c0_56] : memref<8x1xf32, #tpu.memory_space<vmem>>, vector<8x1xf32>
    %65 = arith.mulf %58, %58 : vector<8x384xf32>
    %cst_57 = arith.constant dense<0.000000e+00> : vector<8xf32>
    %66 = vector.multi_reduction <add>, %65, %cst_57 [1] : vector<8x384xf32> to vector<8xf32>
    %67 = vector.shape_cast %66 : vector<8xf32> to vector<8x1xf32>
    %68 = arith.addf %64, %67 : vector<8x1xf32>
    %c0_58 = arith.constant 0 : index
    %c0_59 = arith.constant 0 : index
    %69 = vector.load %arg9[%c0_58, %c0_59] : memref<8x1xf32, #tpu.memory_space<vmem>>, vector<8x1xf32>
    tpu.vector_store %arg9[%c0_58, %c0_59], %68 {strides = array<i32>} : memref<8x1xf32, #tpu.memory_space<vmem>>, vector<8x1xf32>,
    %c1_i32 = arith.constant 1 : i32
    %70 = arith.cmpi eq, %arg0, %c1_i32 : i32
    %71 = arith.extui %70 : i1 to i32
    %c0_i32_60 = arith.constant 0 : i32
    %72 = arith.cmpi ne, %71, %c0_i32_60 : i32
    scf.if %72 {
      %c0_61 = arith.constant 0 : index
      %c0_62 = arith.constant 0 : index
      %73 = vector.load %arg8[%c0_61, %c0_62] : memref<8x1xf32, #tpu.memory_space<vmem>>, vector<8x1xf32>
      %cst_63 = arith.constant 0.001953125 : f32
      %74 = vector.broadcast %cst_63 : f32 to vector<8x1xf32>
      %75 = arith.mulf %73, %74 : vector<8x1xf32>
      %c0_64 = arith.constant 0 : index
      %c0_65 = arith.constant 0 : index
      %76 = vector.load %arg9[%c0_64, %c0_65] : memref<8x1xf32, #tpu.memory_space<vmem>>, vector<8x1xf32>
      %cst_66 = arith.constant 0.001953125 : f32
      %77 = vector.broadcast %cst_66 : f32 to vector<8x1xf32>
      %78 = arith.mulf %76, %77 : vector<8x1xf32>
      %79 = arith.mulf %75, %75 : vector<8x1xf32>
      %80 = arith.subf %78, %79 : vector<8x1xf32>
      %cst_67 = arith.constant 9.99999974E-6 : f32
      %81 = vector.broadcast %cst_67 : f32 to vector<8x1xf32>
      %82 = arith.addf %80, %81 : vector<8x1xf32>
      %83 = math.rsqrt %82 : vector<8x1xf32>
      %c0_68 = arith.constant 0 : index
      %c0_69 = arith.constant 0 : index
      %84 = vector.load %arg4[%c0_68, %c0_69] : memref<8x1xf32, #tpu.memory_space<vmem>>, vector<8x1xf32>
      %85 = arith.mulf %84, %83 : vector<8x1xf32>
      %c0_70 = arith.constant 0 : index
      %c0_71 = arith.constant 0 : index
      %86 = vector.load %arg6[%c0_70, %c0_71] : memref<8x1xf32, #tpu.memory_space<vmem>>, vector<8x1xf32>
      tpu.vector_store %arg6[%c0_70, %c0_71], %85 {strides = array<i32>} : memref<8x1xf32, #tpu.memory_space<vmem>>, vector<8x1xf32>,
      %c0_72 = arith.constant 0 : index
      %c0_73 = arith.constant 0 : index
      %87 = vector.load %arg5[%c0_72, %c0_73] : memref<8x1xf32, #tpu.memory_space<vmem>>, vector<8x1xf32>
      %88 = arith.mulf %75, %85 : vector<8x1xf32>
      %89 = arith.subf %87, %88 : vector<8x1xf32>
      %c0_74 = arith.constant 0 : index
      %c0_75 = arith.constant 0 : index
      %90 = vector.load %arg7[%c0_74, %c0_75] : memref<8x1xf32, #tpu.memory_space<vmem>>, vector<8x1xf32>
      tpu.vector_store %arg7[%c0_74, %c0_75], %89 {strides = array<i32>} : memref<8x1xf32, #tpu.memory_space<vmem>>, vector<8x1xf32>,
    } else {
    }
    return
  }
  func.func @transform_0(%arg0: i32) -> (i32, i32, i32) {
    %c0_i32 = arith.constant 0 : i32
    %c0_i32_0 = arith.constant 0 : i32
    %c0_i32_1 = arith.constant 0 : i32
    return %arg0, %c0_i32, %c0_i32_0 : i32, i32, i32
  }
  func.func @transform_1(%arg0: i32) -> (i32, i32, i32) {
    %c0_i32 = arith.constant 0 : i32
    %c0_i32_0 = arith.constant 0 : i32
    %c0_i32_1 = arith.constant 0 : i32
    %c0_i32_2 = arith.constant 0 : i32
    return %c0_i32, %c0_i32_0, %c0_i32_1 : i32, i32, i32
  }
  func.func @transform_2(%arg0: i32) -> (i32, i32) {
    %c0_i32 = arith.constant 0 : i32
    %c0_i32_0 = arith.constant 0 : i32
    %c0_i32_1 = arith.constant 0 : i32
    return %c0_i32, %c0_i32_0 : i32, i32
  }
  func.func @transform_3(%arg0: i32) -> (i32, i32) {
    %c0_i32 = arith.constant 0 : i32
    %c0_i32_0 = arith.constant 0 : i32
    %c0_i32_1 = arith.constant 0 : i32
    return %c0_i32, %c0_i32_0 : i32, i32
  }
  func.func @transform_4(%arg0: i32) -> (i32, i32) {
    %c0_i32 = arith.constant 0 : i32
    %c0_i32_0 = arith.constant 0 : i32
    %c0_i32_1 = arith.constant 0 : i32
    return %c0_i32, %c0_i32_0 : i32, i32
  }
  func.func @transform_5(%arg0: i32) -> (i32, i32) {
    %c0_i32 = arith.constant 0 : i32
    %c0_i32_0 = arith.constant 0 : i32
    %c0_i32_1 = arith.constant 0 : i32
    return %c0_i32, %c0_i32_0 : i32, i32
  }
  func.func @transform_6(%arg0: i32) -> (i32, i32) {
    %c0_i32 = arith.constant 0 : i32
    %c0_i32_0 = arith.constant 0 : i32
    %c0_i32_1 = arith.constant 0 : i32
    return %c0_i32, %c0_i32_0 : i32, i32
  }
}

module attributes {stable_mosaic.version = 11 : i64} {
  func.func @_conv_bn_relu_kernel(%arg0: i32, %arg1: memref<1x8x422xbf16, #tpu.memory_space<vmem>>, %arg2: memref<9x8x8xbf16, #tpu.memory_space<vmem>>, %arg3: memref<8x1xf32, #tpu.memory_space<vmem>>, %arg4: memref<8x1xf32, #tpu.memory_space<vmem>>, %arg5: memref<1x8x384xf32, #tpu.memory_space<vmem>>) attributes {dimension_semantics = [#tpu.dimension_semantics<parallel>], iteration_bounds = array<i64: 2>, scalar_prefetch = 0 : i64, scratch_operands = 0 : i64, tpu.core_type = #tpu.core_type<tc>, window_params = [{transform_indices = @transform_0, window_bounds = array<i64: 1, 8, 422>}, {pipeline_mode = #tpu.pipeline_mode<synchronous>, transform_indices = @transform_1, window_bounds = array<i64: 9, 8, 8>}, {pipeline_mode = #tpu.pipeline_mode<synchronous>, transform_indices = @transform_2, window_bounds = array<i64: 8, 1>}, {pipeline_mode = #tpu.pipeline_mode<synchronous>, transform_indices = @transform_3, window_bounds = array<i64: 8, 1>}, {transform_indices = @transform_4, window_bounds = array<i64: 1, 8, 384>}]} {
    %c0 = arith.constant 0 : index
    %c0_0 = arith.constant 0 : index
    %c0_1 = arith.constant 0 : index
    %0 = vector.load %arg2[%c0, %c0_0, %c0_1] : memref<9x8x8xbf16, #tpu.memory_space<vmem>>, vector<1x8x8xbf16>
    %1 = vector.shape_cast %0 : vector<1x8x8xbf16> to vector<8x8xbf16>
    %c0_2 = arith.constant 0 : index
    %c0_3 = arith.constant 0 : index
    %c0_4 = arith.constant 0 : index
    %2 = vector.load %arg1[%c0_2, %c0_3, %c0_4] : memref<1x8x422xbf16, #tpu.memory_space<vmem>>, vector<1x8x384xbf16>
    %3 = vector.shape_cast %2 : vector<1x8x384xbf16> to vector<8x384xbf16>
    %cst = arith.constant dense<0.000000e+00> : vector<8x384xf32>
    %4 = tpu.matmul %1, %3, %cst {dimension_numbers = #tpu.dot_dimension_numbers<[1], [0], [0], [1], [0, 0, 1, 1], [], []>} : vector<8x8xbf16>, vector<8x384xbf16>, vector<8x384xf32> -> vector<8x384xf32>
    %c1 = arith.constant 1 : index
    %c0_5 = arith.constant 0 : index
    %c0_6 = arith.constant 0 : index
    %5 = vector.load %arg2[%c1, %c0_5, %c0_6] : memref<9x8x8xbf16, #tpu.memory_space<vmem>>, vector<1x8x8xbf16>
    %6 = vector.shape_cast %5 : vector<1x8x8xbf16> to vector<8x8xbf16>
    %c0_7 = arith.constant 0 : index
    %c0_8 = arith.constant 0 : index
    %c1_9 = arith.constant 1 : index
    %7 = vector.load %arg1[%c0_7, %c0_8, %c1_9] : memref<1x8x422xbf16, #tpu.memory_space<vmem>>, vector<1x8x384xbf16>
    %8 = vector.shape_cast %7 : vector<1x8x384xbf16> to vector<8x384xbf16>
    %cst_10 = arith.constant dense<0.000000e+00> : vector<8x384xf32>
    %9 = tpu.matmul %6, %8, %cst_10 {dimension_numbers = #tpu.dot_dimension_numbers<[1], [0], [0], [1], [0, 0, 1, 1], [], []>} : vector<8x8xbf16>, vector<8x384xbf16>, vector<8x384xf32> -> vector<8x384xf32>
    %10 = arith.addf %4, %9 : vector<8x384xf32>
    %c2 = arith.constant 2 : index
    %c0_11 = arith.constant 0 : index
    %c0_12 = arith.constant 0 : index
    %11 = vector.load %arg2[%c2, %c0_11, %c0_12] : memref<9x8x8xbf16, #tpu.memory_space<vmem>>, vector<1x8x8xbf16>
    %12 = vector.shape_cast %11 : vector<1x8x8xbf16> to vector<8x8xbf16>
    %c0_13 = arith.constant 0 : index
    %c0_14 = arith.constant 0 : index
    %c2_15 = arith.constant 2 : index
    %13 = vector.load %arg1[%c0_13, %c0_14, %c2_15] : memref<1x8x422xbf16, #tpu.memory_space<vmem>>, vector<1x8x384xbf16>
    %14 = vector.shape_cast %13 : vector<1x8x384xbf16> to vector<8x384xbf16>
    %cst_16 = arith.constant dense<0.000000e+00> : vector<8x384xf32>
    %15 = tpu.matmul %12, %14, %cst_16 {dimension_numbers = #tpu.dot_dimension_numbers<[1], [0], [0], [1], [0, 0, 1, 1], [], []>} : vector<8x8xbf16>, vector<8x384xbf16>, vector<8x384xf32> -> vector<8x384xf32>
    %16 = arith.addf %10, %15 : vector<8x384xf32>
    %c3 = arith.constant 3 : index
    %c0_17 = arith.constant 0 : index
    %c0_18 = arith.constant 0 : index
    %17 = vector.load %arg2[%c3, %c0_17, %c0_18] : memref<9x8x8xbf16, #tpu.memory_space<vmem>>, vector<1x8x8xbf16>
    %18 = vector.shape_cast %17 : vector<1x8x8xbf16> to vector<8x8xbf16>
    %c0_19 = arith.constant 0 : index
    %c0_20 = arith.constant 0 : index
    %c18 = arith.constant 18 : index
    %19 = vector.load %arg1[%c0_19, %c0_20, %c18] : memref<1x8x422xbf16, #tpu.memory_space<vmem>>, vector<1x8x384xbf16>
    %20 = vector.shape_cast %19 : vector<1x8x384xbf16> to vector<8x384xbf16>
    %cst_21 = arith.constant dense<0.000000e+00> : vector<8x384xf32>
    %21 = tpu.matmul %18, %20, %cst_21 {dimension_numbers = #tpu.dot_dimension_numbers<[1], [0], [0], [1], [0, 0, 1, 1], [], []>} : vector<8x8xbf16>, vector<8x384xbf16>, vector<8x384xf32> -> vector<8x384xf32>
    %22 = arith.addf %16, %21 : vector<8x384xf32>
    %c4 = arith.constant 4 : index
    %c0_22 = arith.constant 0 : index
    %c0_23 = arith.constant 0 : index
    %23 = vector.load %arg2[%c4, %c0_22, %c0_23] : memref<9x8x8xbf16, #tpu.memory_space<vmem>>, vector<1x8x8xbf16>
    %24 = vector.shape_cast %23 : vector<1x8x8xbf16> to vector<8x8xbf16>
    %c0_24 = arith.constant 0 : index
    %c0_25 = arith.constant 0 : index
    %c19 = arith.constant 19 : index
    %25 = vector.load %arg1[%c0_24, %c0_25, %c19] : memref<1x8x422xbf16, #tpu.memory_space<vmem>>, vector<1x8x384xbf16>
    %26 = vector.shape_cast %25 : vector<1x8x384xbf16> to vector<8x384xbf16>
    %cst_26 = arith.constant dense<0.000000e+00> : vector<8x384xf32>
    %27 = tpu.matmul %24, %26, %cst_26 {dimension_numbers = #tpu.dot_dimension_numbers<[1], [0], [0], [1], [0, 0, 1, 1], [], []>} : vector<8x8xbf16>, vector<8x384xbf16>, vector<8x384xf32> -> vector<8x384xf32>
    %28 = arith.addf %22, %27 : vector<8x384xf32>
    %c5 = arith.constant 5 : index
    %c0_27 = arith.constant 0 : index
    %c0_28 = arith.constant 0 : index
    %29 = vector.load %arg2[%c5, %c0_27, %c0_28] : memref<9x8x8xbf16, #tpu.memory_space<vmem>>, vector<1x8x8xbf16>
    %30 = vector.shape_cast %29 : vector<1x8x8xbf16> to vector<8x8xbf16>
    %c0_29 = arith.constant 0 : index
    %c0_30 = arith.constant 0 : index
    %c20 = arith.constant 20 : index
    %31 = vector.load %arg1[%c0_29, %c0_30, %c20] : memref<1x8x422xbf16, #tpu.memory_space<vmem>>, vector<1x8x384xbf16>
    %32 = vector.shape_cast %31 : vector<1x8x384xbf16> to vector<8x384xbf16>
    %cst_31 = arith.constant dense<0.000000e+00> : vector<8x384xf32>
    %33 = tpu.matmul %30, %32, %cst_31 {dimension_numbers = #tpu.dot_dimension_numbers<[1], [0], [0], [1], [0, 0, 1, 1], [], []>} : vector<8x8xbf16>, vector<8x384xbf16>, vector<8x384xf32> -> vector<8x384xf32>
    %34 = arith.addf %28, %33 : vector<8x384xf32>
    %c6 = arith.constant 6 : index
    %c0_32 = arith.constant 0 : index
    %c0_33 = arith.constant 0 : index
    %35 = vector.load %arg2[%c6, %c0_32, %c0_33] : memref<9x8x8xbf16, #tpu.memory_space<vmem>>, vector<1x8x8xbf16>
    %36 = vector.shape_cast %35 : vector<1x8x8xbf16> to vector<8x8xbf16>
    %c0_34 = arith.constant 0 : index
    %c0_35 = arith.constant 0 : index
    %c36 = arith.constant 36 : index
    %37 = vector.load %arg1[%c0_34, %c0_35, %c36] : memref<1x8x422xbf16, #tpu.memory_space<vmem>>, vector<1x8x384xbf16>
    %38 = vector.shape_cast %37 : vector<1x8x384xbf16> to vector<8x384xbf16>
    %cst_36 = arith.constant dense<0.000000e+00> : vector<8x384xf32>
    %39 = tpu.matmul %36, %38, %cst_36 {dimension_numbers = #tpu.dot_dimension_numbers<[1], [0], [0], [1], [0, 0, 1, 1], [], []>} : vector<8x8xbf16>, vector<8x384xbf16>, vector<8x384xf32> -> vector<8x384xf32>
    %40 = arith.addf %34, %39 : vector<8x384xf32>
    %c7 = arith.constant 7 : index
    %c0_37 = arith.constant 0 : index
    %c0_38 = arith.constant 0 : index
    %41 = vector.load %arg2[%c7, %c0_37, %c0_38] : memref<9x8x8xbf16, #tpu.memory_space<vmem>>, vector<1x8x8xbf16>
    %42 = vector.shape_cast %41 : vector<1x8x8xbf16> to vector<8x8xbf16>
    %c0_39 = arith.constant 0 : index
    %c0_40 = arith.constant 0 : index
    %c37 = arith.constant 37 : index
    %43 = vector.load %arg1[%c0_39, %c0_40, %c37] : memref<1x8x422xbf16, #tpu.memory_space<vmem>>, vector<1x8x384xbf16>
    %44 = vector.shape_cast %43 : vector<1x8x384xbf16> to vector<8x384xbf16>
    %cst_41 = arith.constant dense<0.000000e+00> : vector<8x384xf32>
    %45 = tpu.matmul %42, %44, %cst_41 {dimension_numbers = #tpu.dot_dimension_numbers<[1], [0], [0], [1], [0, 0, 1, 1], [], []>} : vector<8x8xbf16>, vector<8x384xbf16>, vector<8x384xf32> -> vector<8x384xf32>
    %46 = arith.addf %40, %45 : vector<8x384xf32>
    %c8 = arith.constant 8 : index
    %c0_42 = arith.constant 0 : index
    %c0_43 = arith.constant 0 : index
    %47 = vector.load %arg2[%c8, %c0_42, %c0_43] : memref<9x8x8xbf16, #tpu.memory_space<vmem>>, vector<1x8x8xbf16>
    %48 = vector.shape_cast %47 : vector<1x8x8xbf16> to vector<8x8xbf16>
    %c0_44 = arith.constant 0 : index
    %c0_45 = arith.constant 0 : index
    %c38 = arith.constant 38 : index
    %49 = vector.load %arg1[%c0_44, %c0_45, %c38] : memref<1x8x422xbf16, #tpu.memory_space<vmem>>, vector<1x8x384xbf16>
    %50 = vector.shape_cast %49 : vector<1x8x384xbf16> to vector<8x384xbf16>
    %cst_46 = arith.constant dense<0.000000e+00> : vector<8x384xf32>
    %51 = tpu.matmul %48, %50, %cst_46 {dimension_numbers = #tpu.dot_dimension_numbers<[1], [0], [0], [1], [0, 0, 1, 1], [], []>} : vector<8x8xbf16>, vector<8x384xbf16>, vector<8x384xf32> -> vector<8x384xf32>
    %52 = arith.addf %46, %51 : vector<8x384xf32>
    %c0_47 = arith.constant 0 : index
    %c0_48 = arith.constant 0 : index
    %53 = vector.load %arg3[%c0_47, %c0_48] : memref<8x1xf32, #tpu.memory_space<vmem>>, vector<8x1xf32>
    %54 = vector.broadcast %53 : vector<8x1xf32> to vector<8x384xf32>
    %55 = arith.mulf %52, %54 : vector<8x384xf32>
    %c0_49 = arith.constant 0 : index
    %c0_50 = arith.constant 0 : index
    %56 = vector.load %arg4[%c0_49, %c0_50] : memref<8x1xf32, #tpu.memory_space<vmem>>, vector<8x1xf32>
    %57 = vector.broadcast %56 : vector<8x1xf32> to vector<8x384xf32>
    %58 = arith.addf %55, %57 : vector<8x384xf32>
    %cst_51 = arith.constant 0.000000e+00 : f32
    %59 = vector.broadcast %cst_51 : f32 to vector<8x384xf32>
    %60 = arith.maximumf %58, %59 : vector<8x384xf32>
    %c0_52 = arith.constant 0 : index
    %c0_53 = arith.constant 0 : index
    %c0_54 = arith.constant 0 : index
    %61 = vector.load %arg5[%c0_52, %c0_53, %c0_54] : memref<1x8x384xf32, #tpu.memory_space<vmem>>, vector<1x8x384xf32>
    %62 = vector.shape_cast %61 : vector<1x8x384xf32> to vector<8x384xf32>
    %63 = vector.shape_cast %60 : vector<8x384xf32> to vector<1x8x384xf32>
    tpu.vector_store %arg5[%c0_52, %c0_53, %c0_54], %63 {strides = array<i32>} : memref<1x8x384xf32, #tpu.memory_space<vmem>>, vector<1x8x384xf32>,
    return
  }
  func.func @transform_0(%arg0: i32) -> (i32, i32, i32) {
    %c0_i32 = arith.constant 0 : i32
    %c0_i32_0 = arith.constant 0 : i32
    %c0_i32_1 = arith.constant 0 : i32
    return %arg0, %c0_i32, %c0_i32_0 : i32, i32, i32
  }
  func.func @transform_1(%arg0: i32) -> (i32, i32, i32) {
    %c0_i32 = arith.constant 0 : i32
    %c0_i32_0 = arith.constant 0 : i32
    %c0_i32_1 = arith.constant 0 : i32
    %c0_i32_2 = arith.constant 0 : i32
    return %c0_i32, %c0_i32_0, %c0_i32_1 : i32, i32, i32
  }
  func.func @transform_2(%arg0: i32) -> (i32, i32) {
    %c0_i32 = arith.constant 0 : i32
    %c0_i32_0 = arith.constant 0 : i32
    %c0_i32_1 = arith.constant 0 : i32
    return %c0_i32, %c0_i32_0 : i32, i32
  }
  func.func @transform_3(%arg0: i32) -> (i32, i32) {
    %c0_i32 = arith.constant 0 : i32
    %c0_i32_0 = arith.constant 0 : i32
    %c0_i32_1 = arith.constant 0 : i32
    return %c0_i32, %c0_i32_0 : i32, i32
  }
  func.func @transform_4(%arg0: i32) -> (i32, i32, i32) {
    %c0_i32 = arith.constant 0 : i32
    %c0_i32_0 = arith.constant 0 : i32
    %c0_i32_1 = arith.constant 0 : i32
    return %arg0, %c0_i32, %c0_i32_0 : i32, i32, i32
  }
}

</mosaic_0001>

<bundles_post_ra>
// kernel: _fwd.2
= control target key start
LH: loop header
LB: loop body
LE: loop exit
PB: predicated region body
PF: predicated region fallthrough
CT: control target
= control target key end

     0   :  { %12 = vsyncpa [#allocation5], 0  ;;  %s2481_s0 = inlined_call_operand.hbm [shape: bf16[2,8,422], index: 0, kind: input, shape index: {}]   ;;  %s2482_s1 = inlined_call_operand.hbm [shape: bf16[9,8,8], index: 1, kind: input, shape index: {}]   ;;  %s2483_s2 = inlined_call_operand.hbm [shape: f32[1,384], index: 2, kind: input, shape index: {}]   ;;  %s2484_s3 = inlined_call_operand.hbm [shape: f32[8,1], index: 3, kind: input, shape index: {}]   ;;  %s2485_s4 = inlined_call_operand.hbm [shape: f32[8,1], index: 4, kind: input, shape index: {}]   ;;  %s2486_s5 = inlined_call_operand.hbm [shape: f32[8,1], index: 5, kind: output, shape index: {0}]   ;;  %s2487_s6 = inlined_call_operand.hbm [shape: f32[8,1], index: 6, kind: output, shape index: {1}]  }
   0x1   :  { %14 = vsyncpa [#allocation5 + $0x1], 0 }
   0x2   :  { %15 = vsyncpa [#allocation8], 0 }
   0x3   :  { %16 = vsyncpa [#allocation11], 0 }
   0x4   :  { %17 = vsyncpa [#allocation6], 0 }
   0x5   :  { %18 = vsyncpa [#allocation15], 0  ;;  %s2088_s21 = smov 0   ;;  %s2090_s22 = smov 0  }
   0x6   :  { %s2092_s23 = smov 0   ;;  %s2094_s24 = smov 0  }
   0x7 LB: > { %s2032_s25 = smov [#allocation7]   ;;  %s2109_s27 = sadd.s32 4294967295, %s2030_s24   ;;  %s2030_s24 = sphi %s2094_s24, %s2505_s24   ;;  %s2026_s23 = sphi %s2092_s23, %s2504_s23   ;;  %s2022_s22 = sphi %s2090_s22, %s2503_s22   ;;  %s2018_s21 = sphi %s2088_s21, %s2502_s21  }
   0x8   : > { %s193_s26 = sshll.u32 %s2032_s25, 4  ;;  %p1479_p0 = scmp.ge.s32.totalorder %s2030_s24, 1  ;;  %s2115_s26 = int_to_ptr.vmem [resolvable:$true] %s193_s26 }
   0x9   : > { %p2488_p1 = scmp.eq.s32.totalorder %s2109_s27, 0  ;;  %p181_p2 = scmp.lt.s32.totalorder %s2030_s24, 3 }
   0xa   : > { %s2033_s29 = smov [#allocation10]   ;;  %s2034_s8 = smov [#allocation9]  }
   0xb   : > { %p2117_p4 = pnand %p1479_p0, %p181_p2  ;;  %s218_s30 = sshll.u32 %s2033_s29, 4  ;;  %s2129_s30 = int_to_ptr.vmem [resolvable:$true] %s218_s30 }
   0xc   : > { %s207_s9 = sshll.u32 %s2034_s8, 4  ;;  %s1786_s12 = scalar_lea.hbm %s2482_s1, 576  ;;  %s2131_s9 = int_to_ptr.vmem [resolvable:$true] %s207_s9 }
   0xd   : > { %s2490_s28 = scalar_select %p2117_p4, 1, 0 }
   0xe   : > { %p1697_p5 = pneg %p2117_p4  ;;  %p1787_p7 = scmp.ne.s32.totalorder %s2482_s1, %s1786_s12 }
   0xf   : > { %p1793_p11 = scmp.lt.u32.totalorder %s1786_s12, %s2482_s1 }
  0x10   : > { %p2125_p6 = pnand %p1697_p5, %p2488_p1 }
  0x12   : > { %p2141_p8 = pneg %p2125_p6 }
  0x14   : > { %p1789_p9 = pnand %p2141_p8, %p1787_p7 }
  0x16   : > { %p1790_p10 = pneg %p1789_p9 }
  0x18   : > { %p1795_p12 = pnand %p1793_p11, %p1790_p10 }
  0x1a   : > { %1798 = shalt.err (!%p1795_p12)
}
  0x1b   : > { %s1799_s18 = scalar_lea.vmem %s2115_s26, 576  ;;  %p1807_p5 = scmp.lt.s32.totalorder %s2115_s26, %s2115_s26 }
  0x1c   : > { %p1800_p13 = scmp.ne.s32.totalorder %s2115_s26, %s1799_s18  ;;  %p1808_p3 = scmp.lt.s32.totalorder %s1799_s18, %s1799_s18 }
  0x1e   : > { %p1802_p0 = pnand %p1800_p13, %p2141_p8  ;;  %p1809_p7 = por %p1808_p3, %p1807_p5 }
  0x20   : > { %p1803_p2 = pneg %p1802_p0 }
  0x22   : > { %p1810_p9 = pnand %p1809_p7, %p1803_p2 }
  0x24   : > { %1813 = shalt.err (!%p1810_p9)
}
  0x25   : > { %s2035_s19 = smov 64   ;;  %s2036_s20 = smov 4  }
  0x26   : > { %1700 = dma.hbm_to_vmem [thread:$0]  (!%p2125_p6), %s2482_s1, 576, %s2115_s26, [#allocation8], %s2035_s19, %s2035_s19, %s2036_s20  }
  0x27   : > { %s1814_s11 = scalar_lea.hbm %s2484_s3, 128 }
  0x28   : > { %p1815_p3 = scmp.ne.s32.totalorder %s2484_s3, %s1814_s11  ;;  %p1821_p12 = scmp.lt.u32.totalorder %s1814_s11, %s2484_s3 }
  0x2a   : > { %p1817_p10 = pnand %p1815_p3, %p2141_p8 }
  0x2c   : > { %p1818_p11 = pneg %p1817_p10 }
  0x2e   : > { %p1823_p13 = pnand %p1821_p12, %p1818_p11 }
  0x30   : > { %1826 = shalt.err (!%p1823_p13)
}
  0x31   : > { %s1827_s26 = scalar_lea.vmem %s2129_s30, 128  ;;  %p1835_p7 = scmp.lt.s32.totalorder %s2129_s30, %s2129_s30 }
  0x32   : > { %p1828_p0 = scmp.ne.s32.totalorder %s2129_s30, %s1827_s26  ;;  %p1836_p9 = scmp.lt.s32.totalorder %s1827_s26, %s1827_s26 }
  0x34   : > { %p1830_p2 = pnand %p1828_p0, %p2141_p8  ;;  %p1837_p3 = por %p1836_p9, %p1835_p7 }
  0x36   : > { %p1831_p5 = pneg %p1830_p2 }
  0x38   : > { %p1838_p10 = pnand %p1837_p3, %p1831_p5 }
  0x3a   : > { %1841 = shalt.err (!%p1838_p10)
}
  0x3b   : > { %1706 = dma.hbm_to_vmem [thread:$0]  (!%p2125_p6), %s2484_s3, 128, %s2129_s30, [#allocation11]  }
  0x3c   : > { %s1842_s25 = scalar_lea.hbm %s2483_s2, 48 }
  0x3d   : > { %p1843_p11 = scmp.ne.s32.totalorder %s2483_s2, %s1842_s25  ;;  %p1849_p0 = scmp.lt.u32.totalorder %s1842_s25, %s2483_s2 }
  0x3f   : > { %p1845_p12 = pnand %p1843_p11, %p2141_p8 }
  0x41   : > { %p1846_p13 = pneg %p1845_p12 }
  0x43   : > { %p1851_p2 = pnand %p1849_p0, %p1846_p13 }
  0x45   : > { %1854 = shalt.err (!%p1851_p2)
}
  0x46   : > { %s1855_s30 = scalar_lea.vmem %s2131_s9, 48  ;;  %s1862_s12 = scalar_lea.vmem %s2131_s9, 64 }
  0x47   : > { %p1856_p5 = scmp.ne.s32.totalorder %s2131_s9, %s1855_s30  ;;  %p1863_p3 = scmp.lt.s32.totalorder %s2131_s9, %s2131_s9 }
  0x48   : > { %p1864_p10 = scmp.lt.s32.totalorder %s1862_s12, %s1855_s30 }
  0x49   : > { %p1858_p7 = pnand %p1856_p5, %p2141_p8 }
  0x4a   : > { %p1865_p11 = por %p1864_p10, %p1863_p3 }
  0x4b   : > { %p1859_p9 = pneg %p1858_p7 }
  0x4d   : > { %p1866_p12 = pnand %p1865_p11, %p1859_p9 }
  0x4f   : > { %1869 = shalt.err (!%p1866_p12)
}
  0x50   : > { %1703 = dma.hbm_to_vmem [thread:$0]  (!%p2125_p6), %s2483_s2, 48, %s2131_s9, [#allocation8]  }
  0x51   : > { %s2037_s16 = smov [#allocation12]   ;;  %s1870_s19 = scalar_lea.hbm %s2485_s4, 128 }
  0x52   : > { %s229_s26 = sshll.u32 %s2037_s16, 4  ;;  %p1871_p13 = scmp.ne.s32.totalorder %s2485_s4, %s1870_s19  ;;  %s230_s26 = int_to_ptr.vmem [resolvable:$true] %s229_s26 }
  0x53   : > { %p1877_p5 = scmp.lt.u32.totalorder %s1870_s19, %s2485_s4 }
  0x54   : > { %p1873_p0 = pnand %p1871_p13, %p2141_p8 }
  0x56   : > { %p1874_p2 = pneg %p1873_p0 }
  0x58   : > { %p1879_p7 = pnand %p1877_p5, %p1874_p2 }
  0x5a   : > { %1882 = shalt.err (!%p1879_p7)
}
  0x5b   : > { %s1883_s9 = scalar_lea.vmem %s230_s26, 128  ;;  %p1891_p11 = scmp.lt.s32.totalorder %s230_s26, %s230_s26 }
  0x5c   : > { %p1884_p9 = scmp.ne.s32.totalorder %s230_s26, %s1883_s9  ;;  %p1892_p12 = scmp.lt.s32.totalorder %s1883_s9, %s1883_s9 }
  0x5e   : > { %p1886_p3 = pnand %p1884_p9, %p2141_p8  ;;  %p1893_p1 = por %p1892_p12, %p1891_p11 }
  0x60   : > { %p1887_p10 = pneg %p1886_p3 }
  0x62   : > { %p1894_p4 = pnand %p1893_p1, %p1887_p10 }
  0x64   : > { %1897 = shalt.err (!%p1894_p4)
}
  0x65   : > { %1709 = dma.hbm_to_vmem [thread:$0]  (!%p2125_p6), %s2485_s4, 128, %s230_s26, [#allocation11]  }
  0x66   : > { %s2228_s15 = sadd.s32 1, %s2030_s24   ;;  %s31_s7 = sadd.s32 1, %s2026_s23 }
  0x67   : > { %s28_s30 = ssub.s32 %s2030_s24, %s2228_s15  ;;  %p38_p1 = scmp.ne.s32.totalorder %s2026_s23, %s2022_s22 }
  0x68   : > { %p29_p4 = scmp.eq.s32.totalorder %s28_s30, 0  ;;  %p39_p8 = scmp.eq.s32.totalorder %s2030_s24, 0 }
  0x69   : > { %p44_p13 = scmp.ne.s32.totalorder %s2022_s22, %s2018_s21  ;;  %p1718_p0 = scmp.lt.s32.totalorder %s2030_s24, 2 }
  0x6a   : > { %s2240_s12 = scalar_select %p29_p4, %s2026_s23, %s31_s7  }
  0x6b   : > { %p40_p2 = por %p39_p8, %p38_p1  ;;  %p2493_p5 = scmp.eq.s32.totalorder %s2109_s27, 0 }
  0x6c   : > { %s240_s14 = sand.u32 1, %s2026_s23   ;;  %s1534_s16 = sshll.u32 %s2030_s24, 8 }
  0x6d   : > { %p2244_p7 = por %p2493_p5, %p44_p13  ;;  %s1485_s26 = sshll.u32 %s240_s14, 4 }
  0x6e   : > { %s2253_s19 = scalar_lea.hbm %s2481_s0, %s1534_s16  ;;  %s244_s21 = scalar_lea.vmem [#allocation4], %s1485_s26 }
  0x6f   : > { %s252_s20 = sshll.u32 %s244_s21, 4  ;;  %p2255_p6 = pnand %p1718_p0, %p40_p2  ;;  %s2259_s20 = int_to_ptr.vmem [resolvable:$true] %s252_s20 }
  0x70   : > { %s241_s24 = scalar_lea.sflag [#allocation5], %s240_s14  ;;  %s1898_s29 = scalar_lea.hbm %s2253_s19, 256 }
  0x71   : > { %p1899_p9 = scmp.ne.s32.totalorder %s2253_s19, %s1898_s29  ;;  %p1900_p3 = pneg %p2255_p6 }
  0x72   : > { %s1903_s10 = scalar_lea.hbm %s2481_s0, 512  ;;  %p1904_p12 = scmp.lt.u32.totalorder %s2253_s19, %s2481_s0 }
  0x73   : > { %p1901_p10 = pnand %p1900_p3, %p1899_p9  ;;  %p1905_p1 = scmp.lt.u32.totalorder %s1903_s10, %s1898_s29 }
  0x74   : > { %p1907_p8 = scmp.lt.u32.totalorder %s1898_s29, %s2253_s19 }
  0x75   : > { %p1902_p11 = pneg %p1901_p10  ;;  %p1906_p4 = por %p1905_p1, %p1904_p12 }
  0x77   : > { %p1908_p13 = por %p1907_p8, %p1906_p4 }
  0x79   : > { %p1909_p0 = pnand %p1908_p13, %p1902_p11 }
  0x7b   : > { %1912 = shalt.err (!%p1909_p0)
}
  0x7c   : > { %s1913_s30 = scalar_lea.vmem %s2259_s20, 256  ;;  %s2038_s14 = smov [#allocation4]  }
  0x7d   : > { %p1914_p2 = scmp.ne.s32.totalorder %s2259_s20, %s1913_s30  ;;  %s1918_s16 = sshll.u32 %s2038_s14, 4  ;;  %s1919_s16 = int_to_ptr.vmem [resolvable:$false] %s1918_s16 }
  0x7e   : > { %s1920_s26 = scalar_lea.vmem %s1919_s16, 512  ;;  %p1921_p10 = scmp.lt.s32.totalorder %s2259_s20, %s1919_s16 }
  0x7f   : > { %p1916_p5 = pnand %p1914_p2, %p1900_p3  ;;  %p1922_p12 = scmp.lt.s32.totalorder %s1920_s26, %s1913_s30 }
  0x81   : > { %p1917_p9 = pneg %p1916_p5  ;;  %p1923_p1 = por %p1922_p12, %p1921_p10 }
  0x83   : > { %p1924_p4 = pnand %p1923_p1, %p1917_p9 }
  0x85   : > { %1927 = shalt.err (!%p1924_p4)
}
  0x86   : > { %1713 = dma.hbm_to_vmem [thread:$0]  (!%p2255_p6), %s2253_s19, 256, %s2259_s20, %s241_s24  }
  0x87   : > { %p2496_p11 = scmp.ne.s32.totalorder %s2490_s28, 0 }
  0x88   : > { %s263_s17 = sand.u32 (!%p2496_p11), 1, %s2022_s22  }
  0x89   : > { %261 = sbr.rel (%p2496_p11) target bundleno = 828 (0x33c), region = 40  ;;  %s1489_s18 = sshll.u32 (!%p2496_p11), %s263_s17, 4 }
  0x8a   : > { %s264_s21 = scalar_lea.sflag (!%p2496_p11), [#allocation5], %s263_s17  ;;  %s2289_s29 = scalar_lea.vmem (!%p2496_p11), [#allocation4], %s1489_s18 }
  0x90   : > { %1997 = dma.done.wait (%p2244_p7), %s264_s21, 256  }
  0x91   : > { %1999 = vsyncadd (%p2244_p7), %s264_s21, 4294967040  ;;  %p2497_p3 = scmp.eq.s32.totalorder %s2109_s27, 0 }
  0x93   : > { %2001 = dma.done.wait (%p2497_p3), [#allocation8], 624   ;;  %p2498_p6 = pmov %p2497_p3 }
  0x94   : > { %p2499_p8 = pmov %p2497_p3 }
  0x95   : > { %2003 = vsyncadd (%p2498_p6), [#allocation8], 4294966672 }
  0x96   : > { %2005 = dma.done.wait (%p2499_p8), [#allocation11], 256   ;;  %p2500_p13 = pmov %p2497_p3 }
  0x97   : > { %p2501_p0 = scmp.ne.s32.totalorder %s2109_s27, 0 }
  0x98   : > { %2007 = vsyncadd (%p2500_p13), [#allocation11], 4294967040  ;;  %vm312_vm0 = vcmask (!%p2501_p0), 7168   ;;  %v2039_v0 = vmov (!%p2501_p0), 0.0  }
  0x99   : > { %311 = sbr.rel (%p2501_p0) target bundleno = 160 (0xa0), region = 64  ;;  %313 = vst.msk [vmem:[#allocation2] sm:$0xff] (!%p2501_p0), %vm312_vm0, %v2039_v0  ;;  %314 = vst.msk [vmem:[#allocation3] sm:$0xff] (!%p2501_p0), %vm312_vm0, %v2039_v0 }
  0xa0 PF: > { %v320_v1 = vld [vmem:[%s2289_s29 + $0x8] sm:$0xff]  ;;  %v316_v2 = vld [vmem:[%s2289_s29] sm:$0xff]  ;;  %s2040_s28 = smov 127   ;;  %v2041_v7 = vmov 0.0   ;;  %v2042_v8 = vmov 0   ;;  %vm2043_vm1 = vmmov 0  }
  0xa1   : > { %v1497_v3 = vcombine.low %v320_v1, %v320_v1  ;;  %v2307_v4 = vcombine.low %v316_v2, %v316_v2  ;;  %v1498_v5 = vcombine.high %v320_v1, %v320_v1  ;;  %v1496_v6 = vcombine.high %v316_v2, %v316_v2  ;;  %1553 = vmatprep.subr.bf16.mxu1 %v2041_v7  ;;  %s2044_s13 = smov 126   ;;  %s2045_s19 = smov 110   ;;  %v1783_v13 = vld [vmem:[%s2289_s29 + $0x8] ss:$0 sps:$4 sm:$0xff]   ;;  %v319_v19 = vld [vmem:[#allocation7 + $0x4] sm:$0xf] }
  0xa2   : > { %389 = vmatprep.mubr.bf16.mxu0 %v2042_v8  ;;  %1555 = vmatprep.mubr.msk.bf16.mxu1 %vm2043_vm1, %v2041_v7  ;;  %s2046_s20 = smov 109   ;;  %s2047_s25 = smov 108   ;;  %vm339_vm2 = vcmask 1039360   ;;  %vm347_vm3 = vcmask 1043456   ;;  %vm343_vm4 = vcmask 64512   ;;  %vm544_vm5 = vcmask 1031168  }
  0xa3   : > { %335 = vrot.lane.b32.xlu1 %v1497_v3, %s2040_s28  ;;  %331 = vrot.lane.b32.xlu0 %v2307_v4, %s2040_s28  ;;  %s2048_s24 = smov 92   ;;  %s2049_s8 = smov 91   ;;  %v445_v20 = vsel %vm347_vm3, %v2307_v4, 0  ;;  %v451_v21 = vsel %vm347_vm3, %v1783_v13, 0  ;;  %v315_v30 = vld [vmem:[#allocation7] sm:$0xf] }
  0xa4   : > { %s2050_s9 = smov 90   ;;  %vm654_vm6 = vcmask 900096   ;;  %v535_v40 = vld [vmem:[#allocation7 + $0x8] sm:$0xf]  ;;  %vm764_vm7 = vcmask 891904   ;;  %vm874_vm8 = vcmask 883712  }
  0xa5   : > { %v645_v50 = vld [vmem:[#allocation7 + $0xc] sm:$0xf]  ;;  %v755_v60 = vld [vmem:[#allocation7 + $0x10] sm:$0xf]  ;;  %vm984_vm9 = vcmask 752640   ;;  %vm1094_vm10 = vcmask 744448  }
  0xa6   : > { %vm1204_vm11 = vcmask 736256   ;;  %vm1330_vm12 = vcmask 7168   ;;  %p1527_p7 = scmp.ne.s32.totalorder %s2109_s27, 1 }
  0xa7   : > { %337 = vrot.lane.b32.xlu1 %v1498_v5, %s2040_s28  ;;  %333 = vrot.lane.b32.xlu0 %v1496_v6, %s2040_s28 }
  0xab   : > { %536 = vrot.lane.b32.xlu0 %v2307_v4, %s2044_s13  ;;  %538 = vrot.lane.b32.xlu1 %v1496_v6, %s2044_s13 }
  0xaf   : > { %540 = vrot.lane.b32.xlu0 %v1497_v3, %s2044_s13  ;;  %542 = vrot.lane.b32.xlu1 %v1498_v5, %s2044_s13 }
  0xb3   : > { %646 = vrot.lane.b32.xlu0 %v2307_v4, %s2045_s19  ;;  %648 = vrot.lane.b32.xlu1 %v1496_v6, %s2045_s19 }
  0xb7   : > { %650 = vrot.lane.b32.xlu0 %v1497_v3, %s2045_s19  ;;  %652 = vrot.lane.b32.xlu1 %v1498_v5, %s2045_s19 }
  0xbb   : > { %756 = vrot.lane.b32.xlu0 %v2307_v4, %s2046_s20  ;;  %758 = vrot.lane.b32.xlu1 %v1496_v6, %s2046_s20 }
  0xbf   : > { %760 = vrot.lane.b32.xlu0 %v1497_v3, %s2046_s20  ;;  %762 = vrot.lane.b32.xlu1 %v1498_v5, %s2046_s20 }
  0xc3   : > { %866 = vrot.lane.b32.xlu0 %v2307_v4, %s2047_s25  ;;  %868 = vrot.lane.b32.xlu1 %v1496_v6, %s2047_s25 }
  0xc7   : > { %870 = vrot.lane.b32.xlu0 %v1497_v3, %s2047_s25  ;;  %872 = vrot.lane.b32.xlu1 %v1498_v5, %s2047_s25 }
  0xcb   : > { %976 = vrot.lane.b32.xlu0 %v2307_v4, %s2048_s24  ;;  %978 = vrot.lane.b32.xlu1 %v1496_v6, %s2048_s24 }
  0xcf   : > { %980 = vrot.lane.b32.xlu0 %v1497_v3, %s2048_s24  ;;  %982 = vrot.lane.b32.xlu1 %v1498_v5, %s2048_s24 }
  0xd3   : > { %1086 = vrot.lane.b32.xlu0 %v2307_v4, %s2049_s8  ;;  %1088 = vrot.lane.b32.xlu1 %v1496_v6, %s2049_s8 }
  0xd7   : > { %1090 = vrot.lane.b32.xlu0 %v1497_v3, %s2049_s8  ;;  %1092 = vrot.lane.b32.xlu1 %v1498_v5, %s2049_s8 }
  0xdb   : > { %1196 = vrot.lane.b32.xlu0 %v2307_v4, %s2050_s9  ;;  %1198 = vrot.lane.b32.xlu1 %v1496_v6, %s2050_s9 }
  0xdf   : > { %1200 = vrot.lane.b32.xlu0 %v1497_v3, %s2050_s9  ;;  %1202 = vrot.lane.b32.xlu1 %v1498_v5, %s2050_s9 }
 0x115   : > { %v336_v9 = vpop.permute.xlu1 %335  ;;  %v332_v10 = vpop.permute.xlu0 %331 }
 0x119   : > { %v338_v11 = vpop.permute.xlu1 %337  ;;  %v334_v12 = vpop.permute.xlu0 %333 }
 0x11a   : > { %v341_v14 = vsel %vm339_vm2, %v334_v12, %v336_v9  ;;  %v340_v15 = vsel %vm339_vm2, %v332_v10, %v334_v12  ;;  %v342_v16 = vsel %vm339_vm2, %v336_v9, %v338_v11 }
 0x11b   : > { %1499 = vmatprep.subr.msk.bf16.mxu0 %vm347_vm3, %v341_v14  ;;  %v349_v17 = vsel %vm347_vm3, %v340_v15, 0  ;;  %v355_v18 = vsel %vm347_vm3, %v342_v16, 0 }
 0x11c   : > { %358 = vmatpush1.bf16.msra.mxu0 %v349_v17  ;;  %1554 = vmatpush3.bf16.msra.mxu1 %v355_v18  ;;  %v975_v18 = vld [vmem:[#allocation7 + $0x18] sm:$0xf] }
 0x11d   : > { %1503 = vmatprep.subr.msk.bf16.mxu0 %vm347_vm3, %v1496_v6  ;;  %1559 = vmatprep.subr.bf16.mxu1 %v2041_v7  ;;  %v537_v22 = vpop.permute.xlu0 %536  ;;  %v539_v23 = vpop.permute.xlu1 %538  ;;  %v865_v6 = vld [vmem:[#allocation7 + $0x14] sm:$0xf] }
 0x11e   : > { %v545_v28 = vsel %vm544_vm5, %v537_v22, %v539_v23 }
 0x11f   : > { %1500 = vmatmul.mubr.msk.bf16.vlgmr.msra.gmra.mrb[0].mxu0 %vm343_vm4, %v319_v19  ;;  %1556 = vmatmul.mubr.msk.bf16.vlgmr.msra.gmra.mrb[0].mxu1 %vm343_vm4, %v319_v19  ;;  %v552_v32 = vsel %vm347_vm3, %v545_v28, 0 }
 0x120   : > { %454 = vmatpush1.bf16.msra.mxu0 %v445_v20  ;;  %1560 = vmatpush3.bf16.msra.mxu1 %v451_v21 }
 0x121   : > { %v541_v24 = vpop.permute.xlu0 %540  ;;  %485 = vmatprep.mubr.bf16.mxu0 %v2042_v8  ;;  %1561 = vmatprep.mubr.msk.bf16.mxu1 %vm2043_vm1, %v2041_v7  ;;  %v543_v26 = vpop.permute.xlu1 %542 }
 0x122   : > { %v546_v25 = vsel %vm544_vm5, %v539_v23, %v541_v24  ;;  %1565 = vmatprep.subr.bf16.mxu1 %v2041_v7  ;;  %v547_v29 = vsel %vm544_vm5, %v541_v24, %v543_v26 }
 0x123   : > { %1506 = vmatprep.subr.msk.bf16.mxu0 %vm347_vm3, %v546_v25  ;;  %v558_v33 = vsel %vm347_vm3, %v547_v29, 0 }
 0x125   : > { %v647_v27 = vpop.permute.xlu0 %646  ;;  %v649_v31 = vpop.permute.xlu1 %648 }
 0x126   : > { %v655_v38 = vsel %vm654_vm6, %v647_v27, %v649_v31  ;;  %v1085_v27 = vld [vmem:[#allocation7 + $0x1c] sm:$0xf] }
 0x127   : > { %v662_v43 = vsel %vm347_vm3, %v655_v38, 0 }
 0x129   : > { %v651_v34 = vpop.permute.xlu0 %650  ;;  %v653_v37 = vpop.permute.xlu1 %652 }
 0x12a   : > { %v656_v35 = vsel %vm654_vm6, %v649_v31, %v651_v34  ;;  %v657_v39 = vsel %vm654_vm6, %v651_v34, %v653_v37  ;;  %v1306_v31 = vlaneseq  ;;  %v1304_v34 = vld [vmem:[#allocation9] sm:$0x7] }
 0x12b   : > { %1504 = vmatmul.mubr.msk.bf16.vlgmr.msra.gmra.mrb[0].mxu0 %vm343_vm4, %v315_v30  ;;  %1562 = vmatmul.mubr.msk.bf16.vlgmr.msra.gmra.mrb[0].mxu1 %vm343_vm4, %v315_v30  ;;  %v668_v44 = vsel %vm347_vm3, %v657_v39, 0  ;;  %v1195_v30 = vld [vmem:[#allocation7 + $0x20] sm:$0xf] }
 0x12c   : > { %561 = vmatpush1.bf16.msra.mxu0 %v552_v32  ;;  %1566 = vmatpush3.bf16.msra.mxu1 %v558_v33  ;;  %v1307_v32 = vshrl.u32 %v1306_v31, 7 }
 0x12d   : > { %592 = vmatprep.mubr.bf16.mxu0 %v2042_v8  ;;  %1567 = vmatprep.mubr.msk.bf16.mxu1 %vm2043_vm1, %v2041_v7  ;;  %v757_v36 = vpop.permute.xlu0 %756  ;;  %v759_v41 = vpop.permute.xlu1 %758 }
 0x12e   : > { %1509 = vmatprep.subr.msk.bf16.mxu0 %vm347_vm3, %v656_v35  ;;  %1571 = vmatprep.subr.bf16.mxu1 %v2041_v7  ;;  %v765_v48 = vsel %vm764_vm7, %v757_v36, %v759_v41  ;;  %v1308_v33 = vsub.s32 0, %v1307_v32  ;;  %v1316_v35 = vsub.s32 2, %v1307_v32  ;;  %v1312_v36 = vsub.s32 1, %v1307_v32 }
 0x12f   : > { %v772_v53 = vsel %vm347_vm3, %v765_v48, 0 }
 0x130   : > { %v1309_v37 = vrot.slane %v1304_v34, %v1308_v33  ;;  %v1317_v38 = vrot.slane %v1304_v34, %v1316_v35  ;;  %v1313_v39 = vrot.slane %v1304_v34, %v1312_v36 }
 0x131   : > { %v761_v42 = vpop.permute.xlu0 %760  ;;  %v763_v47 = vpop.permute.xlu1 %762 }
 0x132   : > { %v766_v45 = vsel %vm764_vm7, %v759_v41, %v761_v42  ;;  %v767_v49 = vsel %vm764_vm7, %v761_v42, %v763_v47 }
 0x133   : > { %v778_v54 = vsel %vm347_vm3, %v767_v49, 0 }
 0x135   : > { %v867_v46 = vpop.permute.xlu0 %866  ;;  %v869_v51 = vpop.permute.xlu1 %868 }
 0x136   : > { %v875_v58 = vsel %vm874_vm8, %v867_v46, %v869_v51 }
 0x137   : > { %1507 = vmatmul.mubr.msk.bf16.vlgmr.msra.gmra.mrb[0].mxu0 %vm343_vm4, %v535_v40  ;;  %1568 = vmatmul.mubr.msk.bf16.vlgmr.msra.gmra.mrb[0].mxu1 %vm343_vm4, %v535_v40  ;;  %v882_v63 = vsel %vm347_vm3, %v875_v58, 0  ;;  %v1332_v58 = vld [vmem:[#allocation3] sm:$0xff] }
 0x138   : > { %671 = vmatpush1.bf16.msra.mxu0 %v662_v43  ;;  %1572 = vmatpush3.bf16.msra.mxu1 %v668_v44 }
 0x139   : > { %702 = vmatprep.mubr.bf16.mxu0 %v2042_v8  ;;  %1573 = vmatprep.mubr.msk.bf16.mxu1 %vm2043_vm1, %v2041_v7  ;;  %v871_v52 = vpop.permute.xlu0 %870  ;;  %v873_v57 = vpop.permute.xlu1 %872 }
 0x13a   : > { %1512 = vmatprep.subr.msk.bf16.mxu0 %vm347_vm3, %v766_v45  ;;  %1577 = vmatprep.subr.bf16.mxu1 %v2041_v7  ;;  %v876_v55 = vsel %vm874_vm8, %v869_v51, %v871_v52  ;;  %v877_v59 = vsel %vm874_vm8, %v871_v52, %v873_v57 }
 0x13b   : > { %v888_v0 = vsel %vm347_vm3, %v877_v59, 0 }
 0x13d   : > { %v977_v56 = vpop.permute.xlu0 %976  ;;  %v979_v61 = vpop.permute.xlu1 %978 }
 0x13e   : > { %v985_v4 = vsel %vm984_vm9, %v977_v56, %v979_v61  ;;  %v1324_v56 = vld [vmem:[#allocation2] sm:$0xff] }
 0x13f   : > { %v992_v11 = vsel %vm347_vm3, %v985_v4, 0 }
 0x141   : > { %v981_v62 = vpop.permute.xlu0 %980  ;;  %v983_v3 = vpop.permute.xlu1 %982 }
 0x142   : > { %v986_v1 = vsel %vm984_vm9, %v979_v61, %v981_v62  ;;  %v987_v5 = vsel %vm984_vm9, %v981_v62, %v983_v3 }
 0x143   : > { %1510 = vmatmul.mubr.msk.bf16.vlgmr.msra.gmra.mrb[0].mxu0 %vm343_vm4, %v645_v50  ;;  %1574 = vmatmul.mubr.msk.bf16.vlgmr.msra.gmra.mrb[0].mxu1 %vm343_vm4, %v645_v50  ;;  %v998_v12 = vsel %vm347_vm3, %v987_v5, 0  ;;  %v1354_v5 = vld [vmem:[#allocation10] sm:$0xff] (!%p1527_p7) }
 0x144   : > { %781 = vmatpush1.bf16.msra.mxu0 %v772_v53  ;;  %1578 = vmatpush3.bf16.msra.mxu1 %v778_v54 }
 0x145   : > { %812 = vmatprep.mubr.bf16.mxu0 %v2042_v8  ;;  %1579 = vmatprep.mubr.msk.bf16.mxu1 %vm2043_vm1, %v2041_v7  ;;  %v1087_v2 = vpop.permute.xlu0 %1086  ;;  %v1089_v9 = vpop.permute.xlu1 %1088 }
 0x146   : > { %1515 = vmatprep.subr.msk.bf16.mxu0 %vm347_vm3, %v876_v55  ;;  %1583 = vmatprep.subr.bf16.mxu1 %v2041_v7  ;;  %v1095_v16 = vsel %vm1094_vm10, %v1087_v2, %v1089_v9 }
 0x147   : > { %v1102_v21 = vsel %vm347_vm3, %v1095_v16, 0 }
 0x149   : > { %v1091_v10 = vpop.permute.xlu0 %1090  ;;  %v1093_v15 = vpop.permute.xlu1 %1092 }
 0x14a   : > { %v1096_v13 = vsel %vm1094_vm10, %v1089_v9, %v1091_v10  ;;  %v1097_v17 = vsel %vm1094_vm10, %v1091_v10, %v1093_v15  ;;  %v1357_v10 = vld [vmem:[#allocation12] sm:$0xff] (!%p1527_p7) }
 0x14b   : > { %v1108_v22 = vsel %vm347_vm3, %v1097_v17, 0 }
 0x14d   : > { %v1197_v14 = vpop.permute.xlu0 %1196  ;;  %v1199_v19 = vpop.permute.xlu1 %1198 }
 0x14e   : > { %v1205_v25 = vsel %vm1204_vm11, %v1197_v14, %v1199_v19 }
 0x14f   : > { %1513 = vmatmul.mubr.msk.bf16.vlgmr.msra.gmra.mrb[0].mxu0 %vm343_vm4, %v755_v60  ;;  %1580 = vmatmul.mubr.msk.bf16.vlgmr.msra.gmra.mrb[0].mxu1 %vm343_vm4, %v755_v60  ;;  %v1212_v28 = vsel %vm347_vm3, %v1205_v25, 0 }
 0x150   : > { %891 = vmatpush1.bf16.msra.mxu0 %v882_v63  ;;  %1584 = vmatpush3.bf16.msra.mxu1 %v888_v0 }
 0x151   : > { %922 = vmatprep.mubr.bf16.mxu0 %v2042_v8  ;;  %1585 = vmatprep.mubr.msk.bf16.mxu1 %vm2043_vm1, %v2041_v7  ;;  %v1201_v20 = vpop.permute.xlu0 %1200  ;;  %v1203_v24 = vpop.permute.xlu1 %1202 }
 0x152   : > { %1518 = vmatprep.subr.msk.bf16.mxu0 %vm347_vm3, %v986_v1  ;;  %1589 = vmatprep.subr.bf16.mxu1 %v2041_v7  ;;  %v1206_v23 = vsel %vm1204_vm11, %v1199_v19, %v1201_v20  ;;  %v1207_v26 = vsel %vm1204_vm11, %v1201_v20, %v1203_v24 }
 0x153   : > { %v1218_v29 = vsel %vm347_vm3, %v1207_v26, 0 }
 0x15b   : > { %1516 = vmatmul.mubr.msk.bf16.vlgmr.msra.gmra.mrb[0].mxu0 %vm343_vm4, %v865_v6  ;;  %1586 = vmatmul.mubr.msk.bf16.vlgmr.msra.gmra.mrb[0].mxu1 %vm343_vm4, %v865_v6 }
 0x15c   : > { %1001 = vmatpush1.bf16.msra.mxu0 %v992_v11  ;;  %1590 = vmatpush3.bf16.msra.mxu1 %v998_v12 }
 0x15d   : > { %1032 = vmatprep.mubr.bf16.mxu0 %v2042_v8  ;;  %1591 = vmatprep.mubr.msk.bf16.mxu1 %vm2043_vm1, %v2041_v7 }
 0x15e   : > { %1521 = vmatprep.subr.msk.bf16.mxu0 %vm347_vm3, %v1096_v13  ;;  %1595 = vmatprep.subr.bf16.mxu1 %v2041_v7 }
 0x167   : > { %1519 = vmatmul.mubr.msk.bf16.vlgmr.msra.gmra.mrb[0].mxu0 %vm343_vm4, %v975_v18  ;;  %1592 = vmatmul.mubr.msk.bf16.vlgmr.msra.gmra.mrb[0].mxu1 %vm343_vm4, %v975_v18 }
 0x168   : > { %1111 = vmatpush1.bf16.msra.mxu0 %v1102_v21  ;;  %1596 = vmatpush3.bf16.msra.mxu1 %v1108_v22 }
 0x169   : > { %1142 = vmatprep.mubr.bf16.mxu0 %v2042_v8  ;;  %1597 = vmatprep.mubr.msk.bf16.mxu1 %vm2043_vm1, %v2041_v7 }
 0x16a   : > { %1524 = vmatprep.subr.msk.bf16.mxu0 %vm347_vm3, %v1206_v23  ;;  %1601 = vmatprep.subr.bf16.mxu1 %v2041_v7 }
 0x173   : > { %1522 = vmatmul.mubr.msk.bf16.vlgmr.msra.gmra.mrb[0].mxu0 %vm343_vm4, %v1085_v27  ;;  %1598 = vmatmul.mubr.msk.bf16.vlgmr.msra.gmra.mrb[0].mxu1 %vm343_vm4, %v1085_v27 }
 0x174   : > { %1221 = vmatpush1.bf16.msra.mxu0 %v1212_v28  ;;  %1602 = vmatpush3.bf16.msra.mxu1 %v1218_v29 }
 0x175   : > { %1252 = vmatprep.mubr.bf16.mxu0 %v2042_v8  ;;  %1603 = vmatprep.mubr.msk.bf16.mxu1 %vm2043_vm1, %v2041_v7 }
 0x17f   : > { %1525 = vmatmul.mubr.msk.bf16.vlgmr.msra.gmra.mrb[0].mxu0 %vm343_vm4, %v1195_v30  ;;  %1604 = vmatmul.mubr.msk.bf16.vlgmr.msra.gmra.mrb[0].mxu1 %vm343_vm4, %v1195_v30 }
 0x252   : > { %v1254_v40 = vpop.f32.mrb[0].mxu0  ;;  %v1295_v41 = vpop.f32.mrb[0].mxu1 }
 0x253   : > { %v1321_v8 = vmul.f32 %v1309_v37, %v1254_v40  ;;  %v1256_v42 = vpop.f32.mrb[1].mxu0  ;;  %v1605_v43 = vpop.f32.mrb[1].mxu1  ;;  %v1323_v7 = vmul.f32 %v1317_v38, %v1295_v41 }
 0x254   : > { %v1322_v44 = vmul.f32 %v1313_v39, %v1256_v42  ;;  %v1258_v45 = vpop.f32.mrb[2].mxu0  ;;  %v1298_v46 = vpop.f32.mrb[2].mxu1 }
 0x255   : > { %v1333_v47 = vmul.f32 %v1321_v8, %v1321_v8  ;;  %v1259_v48 = vpop.f32.mrb[3].mxu0  ;;  %v1606_v49 = vpop.f32.mrb[3].mxu1  ;;  %v1335_v52 = vmul.f32 %v1323_v7, %v1323_v7 }
 0x256   : > { %v1325_v50 = vadd.f32 %v1322_v44, %v1321_v8  ;;  %v1334_v51 = vmul.f32 %v1322_v44, %v1322_v44 }
 0x258   : > { %v1326_v53 = vadd.f32 %v1325_v50, %v1323_v7  ;;  %v1336_v54 = vadd.f32 %v1334_v51, %v1333_v47 }
 0x25a   : > { %1327 = vadd.xlane.f32.xlu0 %v1326_v53  ;;  %v1337_v55 = vadd.f32 %v1336_v54, %v1335_v52 }
 0x25c   : > { %1338 = vadd.xlane.f32.xlu1 %v1337_v55 }
 0x2e6   : > { %1345 = sbr.rel (%p1527_p7) target bundleno = 780 (0x30c), region = 68 }
 0x2e7   : > { %v1328_v57 = vpop.xlane.xlu0 %1327 }
 0x2e8   : > { %v1329_v59 = vadd.f32 %v1328_v57, %v1324_v56 }
 0x2e9   : > { %v1339_v60 = vpop.xlane.xlu1 %1338 }
 0x2ea   : > { %1331 = vst.msk [vmem:[#allocation2] sm:$0xff] %vm1330_vm12, %v1329_v59  ;;  %v1340_v61 = vadd.f32 %v1339_v60, %v1332_v58 }
 0x2ec   : > { %1341 = vst.msk [vmem:[#allocation3] sm:$0xff] %vm1330_vm12, %v1340_v61 }
 0x2f1   : > { %v1346_v62 = vld [vmem:[#allocation2] sm:$0xff] }
 0x2f2   : > { %v1347_v0 = vmul.f32 0.001953125, %v1346_v62 }
 0x2f3   : > { %v1348_v63 = vld [vmem:[#allocation3] sm:$0xff] }
 0x2f4   : > { %v1349_v1 = vmul.f32 0.001953125, %v1348_v63  ;;  %v1350_v2 = vmul.f32 %v1347_v0, %v1347_v0 }
 0x2f6   : > { %v1351_v3 = vsub.f32 %v1349_v1, %v1350_v2 }
 0x2f8   : > { %v1352_v4 = vadd.f32 1e-05, %v1351_v3 }
 0x2fa   : > { %1784 = vrsqrt.f32 %v1352_v4 }
 0x304   : > { %v1785_v6 = vpop.eup %1784 }
 0x305   : > { %v1355_v9 = vmul.f32 %v1785_v6, %v1354_v5 }
 0x307   : > { %1356 = vst.msk [vmem:[#allocation13] sm:$0xff] %vm1330_vm12, %v1355_v9  ;;  %v1358_v11 = vmul.f32 %v1355_v9, %v1347_v0 }
 0x309   : > { %v1359_v12 = vsub.f32 %v1357_v10, %v1358_v11 }
 0x30b   : > { %1360 = vst.msk [vmem:[#allocation14] sm:$0xff] %vm1330_vm12, %v1359_v12 }
 0x30c PF: > { %p1723_p2 = scmp.eq.s32.totalorder %s2109_s27, 1  ;;  %s2051_s10 = smov [#allocation13]  }
 0x30d   : > { %s1368_s11 = sshll.u32 %s2051_s10, 4  ;;  %s2052_s7 = smov [#allocation14]   ;;  %s1369_s11 = int_to_ptr.vmem [resolvable:$true] %s1368_s11 }
 0x30e   : > { %s1379_s30 = sshll.u32 %s2052_s7, 4  ;;  %s1928_s14 = scalar_lea.vmem %s1369_s11, 128  ;;  %s1380_s30 = int_to_ptr.vmem [resolvable:$true] %s1379_s30 }
 0x30f   : > { %p1929_p5 = scmp.ne.s32.totalorder %s1369_s11, %s1928_s14  ;;  %p1935_p12 = scmp.lt.s32.totalorder %s1369_s11, %s1369_s11 }
 0x310   : > { %p1936_p1 = scmp.lt.s32.totalorder %s1928_s14, %s1928_s14 }
 0x311   : > { %p1930_p9 = pnand %p1929_p5, %p1723_p2 }
 0x312   : > { %p1937_p4 = por %p1936_p1, %p1935_p12 }
 0x313   : > { %p1931_p10 = pneg %p1930_p9 }
 0x315   : > { %p1938_p11 = pnand %p1937_p4, %p1931_p10 }
 0x317   : > { %1941 = shalt.err (!%p1938_p11)
}
 0x318   : > { %s1942_s17 = scalar_lea.hbm %s2486_s5, 128 }
 0x319   : > { %p1943_p3 = scmp.ne.s32.totalorder %s2486_s5, %s1942_s17  ;;  %p1948_p13 = scmp.lt.u32.totalorder %s1942_s17, %s2486_s5 }
 0x31b   : > { %p1944_p6 = pnand %p1943_p3, %p1723_p2 }
 0x31d   : > { %p1945_p8 = pneg %p1944_p6 }
 0x31f   : > { %p1950_p0 = pnand %p1948_p13, %p1945_p8 }
 0x321   : > { %1953 = shalt.err (!%p1950_p0)
}
 0x322   : > { %1690 = dma.vmem_to_hbm [thread:$0]  (%p1723_p2), %s1369_s11, 128, %s2486_s5, [#allocation6]  }
 0x323   : > { %s1954_s20 = scalar_lea.vmem %s1380_s30, 128  ;;  %p1961_p10 = scmp.lt.s32.totalorder %s1380_s30, %s1380_s30 }
 0x324   : > { %p1955_p7 = scmp.ne.s32.totalorder %s1380_s30, %s1954_s20  ;;  %p1962_p12 = scmp.lt.s32.totalorder %s1954_s20, %s1954_s20 }
 0x326   : > { %p1956_p5 = pnand %p1955_p7, %p1723_p2  ;;  %p1963_p1 = por %p1962_p12, %p1961_p10 }
 0x328   : > { %p1957_p9 = pneg %p1956_p5 }
 0x32a   : > { %p1964_p4 = pnand %p1963_p1, %p1957_p9 }
 0x32c   : > { %1967 = shalt.err (!%p1964_p4)
}
 0x32d   : > { %s1968_s8 = scalar_lea.hbm %s2487_s6, 128 }
 0x32e   : > { %p1969_p11 = scmp.ne.s32.totalorder %s2487_s6, %s1968_s8  ;;  %p1974_p8 = scmp.lt.u32.totalorder %s1968_s8, %s2487_s6 }
 0x330   : > { %p1970_p3 = pnand %p1969_p11, %p1723_p2 }
 0x332   : > { %p1971_p6 = pneg %p1970_p3 }
 0x334   : > { %p1976_p13 = pnand %p1974_p8, %p1971_p6 }
 0x336   : > { %1979 = shalt.err (!%p1976_p13)
}
 0x337   : > { %1692 = dma.vmem_to_hbm [thread:$0]  (%p1723_p2), %s1380_s30, 128, %s2487_s6, [#allocation15]  }
 0x338   : > { %2009 = dma.done.wait (%p1723_p2), [#allocation6], 128  }
 0x339   : > { %2011 = vsyncadd (%p1723_p2), [#allocation6], 4294967168 }
 0x33a   : > { %2013 = dma.done.wait (%p1723_p2), [#allocation15], 128  }
 0x33b   : > { %2015 = vsyncadd (%p1723_p2), [#allocation15], 4294967168 }
 0x33c PF: > { %p21_p0 = scmp.ge.s32.totalorder %s2228_s15, 4   ;;  %s2502_s21 = smov %s2022_s22 }
 0x33d   : > { %s2503_s22 = smov %s2026_s23  ;;  %s2504_s23 = smov %s2240_s12 }
 0x33e   : > { %s2505_s24 = smov %s2228_s15  ;;  %23 = sbr.rel (!%p21_p0) target bundleno = 7 (0x7), region = 117 }
 0x345   :  { %1396 = vsyncpa [#allocation5], 1 }
 0x346   :  { %1398 = vsyncpa [#allocation5 + $0x1], 1 }
 0x347   :  { %1399 = vsyncpa [#allocation8], 1 }
 0x348   :  { %1400 = vsyncpa [#allocation11], 1 }
 0x349   :  { %1401 = vsyncpa [#allocation6], 1 }
 0x34a   :  { %1403 = vsyncpa [#allocation6 + $0x1], 1 }
 0x34b   :  { %1404 = vsyncpa [#allocation15], 1 }

// kernel: _fwd.3
= control target key start
LH: loop header
LB: loop body
LE: loop exit
PB: predicated region body
PF: predicated region fallthrough
CT: control target
= control target key end

     0   :  { %9 = vsyncpa [#allocation3], 0  ;;  %s2272_s0 = inlined_call_operand.hbm [shape: bf16[2,8,422], index: 0, kind: input, shape index: {}]   ;;  %s2273_s1 = inlined_call_operand.hbm [shape: bf16[9,8,8], index: 1, kind: input, shape index: {}]   ;;  %s2274_s2 = inlined_call_operand.hbm [shape: f32[8,1], index: 2, kind: input, shape index: {}]   ;;  %s2275_s3 = inlined_call_operand.hbm [shape: f32[8,1], index: 3, kind: input, shape index: {}]   ;;  %s2276_s4 = inlined_call_operand.hbm [shape: f32[2,8,384], index: 4, kind: output, shape index: {}]  }
   0x1   :  { %11 = vsyncpa [#allocation3 + $0x1], 0 }
   0x2   :  { %12 = vsyncpa [#allocation6], 0 }
   0x3   :  { %13 = vsyncpa [#allocation9], 0 }
   0x4   :  { %14 = vsyncpa [#allocation4], 0 }
   0x5   :  { %16 = vsyncpa [#allocation4 + $0x1], 0  ;;  %s1900_s15 = smov 0   ;;  %s1902_s16 = smov 0  }
   0x6   :  { %s1904_s17 = smov 0   ;;  %s1906_s18 = smov 0  }
   0x7 LB: > { %s1921_s19 = sadd.s32 4294967295, %s1855_s18   ;;  %s1382_s20 = sadd.s32 4294967294, %s1855_s18   ;;  %s1855_s18 = sphi %s1906_s18, %s2299_s18   ;;  %s1851_s17 = sphi %s1904_s17, %s2298_s17   ;;  %s1847_s16 = sphi %s1902_s16, %s2297_s16   ;;  %s1843_s15 = sphi %s1900_s15, %s2296_s15  }
   0x8   : > { %p42_p0 = scmp.ne.s32.totalorder %s1847_s16, %s1843_s15  ;;  %p2277_p1 = scmp.eq.s32.totalorder %s1921_s19, 0 }
   0x9   : > { %p135_p3 = scmp.eq.s32.totalorder %s1382_s20, 1  ;;  %p1383_p5 = scmp.ge.s32.totalorder %s1855_s18, 1 }
   0xa   : > { %p1930_p4 = por %p2277_p1, %p42_p0  ;;  %p142_p7 = scmp.lt.s32.totalorder %s1855_s18, 3 }
   0xb   : > { %p1935_p6 = por %p135_p3, %p42_p0  ;;  %s1857_s24 = smov [#allocation5]  }
   0xc   : > { %s2280_s21 = scalar_select %p1930_p4, 1, 0 }
   0xd   : > { %s2281_s22 = scalar_select %p1935_p6, 1, 0 }
   0xe   : > { %p1940_p8 = pnand %p1383_p5, %p142_p7  ;;  %s154_s25 = sshll.u32 %s1857_s24, 4  ;;  %s1944_s25 = int_to_ptr.vmem [resolvable:$true] %s154_s25 }
   0xf   : > { %s1858_s27 = smov [#allocation7]   ;;  %s1859_s29 = smov [#allocation8]  }
  0x10   : > { %s2282_s23 = scalar_select %p1940_p8, 1, 0 }
  0x11   : > { %p1586_p9 = pneg %p1940_p8  ;;  %s168_s28 = sshll.u32 %s1858_s27, 4  ;;  %s1955_s28 = int_to_ptr.vmem [resolvable:$true] %s168_s28 }
  0x12   : > { %s1957_s30 = sshll.u32 %s1859_s29, 4  ;;  %s1667_s7 = scalar_lea.hbm %s2273_s1, 576  ;;  %s180_s30 = int_to_ptr.vmem [resolvable:$true] %s1957_s30 }
  0x13   : > { %p1951_p11 = pnand %p1586_p9, %p2277_p1  ;;  %p1668_p12 = scmp.ne.s32.totalorder %s2273_s1, %s1667_s7 }
  0x14   : > { %p1674_p5 = scmp.lt.u32.totalorder %s1667_s7, %s2273_s1 }
  0x15   : > { %p1967_p13 = pneg %p1951_p11 }
  0x17   : > { %p1670_p0 = pnand %p1967_p13, %p1668_p12 }
  0x19   : > { %p1671_p3 = pneg %p1670_p0 }
  0x1b   : > { %p1676_p7 = pnand %p1674_p5, %p1671_p3 }
  0x1d   : > { %1679 = shalt.err (!%p1676_p7)
}
  0x1e   : > { %s1680_s13 = scalar_lea.vmem %s1944_s25, 576  ;;  %p1688_p2 = scmp.lt.s32.totalorder %s1944_s25, %s1944_s25 }
  0x1f   : > { %p1681_p9 = scmp.ne.s32.totalorder %s1944_s25, %s1680_s13  ;;  %p1689_p6 = scmp.lt.s32.totalorder %s1680_s13, %s1680_s13 }
  0x21   : > { %p1683_p10 = pnand %p1681_p9, %p1967_p13  ;;  %p1690_p12 = por %p1689_p6, %p1688_p2 }
  0x23   : > { %p1684_p1 = pneg %p1683_p10 }
  0x25   : > { %p1691_p0 = pnand %p1690_p12, %p1684_p1 }
  0x27   : > { %1694 = shalt.err (!%p1691_p0)
}
  0x28   : > { %s1860_s14 = smov 64   ;;  %s1861_s20 = smov 4  }
  0x29   : > { %1589 = dma.hbm_to_vmem [thread:$0]  (!%p1951_p11), %s2273_s1, 576, %s1944_s25, [#allocation6], %s1860_s14, %s1860_s14, %s1861_s20  }
  0x2a   : > { %s1695_s6 = scalar_lea.hbm %s2274_s2, 128 }
  0x2b   : > { %p1696_p2 = scmp.ne.s32.totalorder %s2274_s2, %s1695_s6  ;;  %p1702_p10 = scmp.lt.u32.totalorder %s1695_s6, %s2274_s2 }
  0x2d   : > { %p1698_p1 = pnand %p1696_p2, %p1967_p13 }
  0x2f   : > { %p1699_p6 = pneg %p1698_p1 }
  0x31   : > { %p1704_p3 = pnand %p1702_p10, %p1699_p6 }
  0x33   : > { %1707 = shalt.err (!%p1704_p3)
}
  0x34   : > { %s1708_s25 = scalar_lea.vmem %s1955_s28, 128  ;;  %p1716_p12 = scmp.lt.s32.totalorder %s1955_s28, %s1955_s28 }
  0x35   : > { %p1709_p5 = scmp.ne.s32.totalorder %s1955_s28, %s1708_s25  ;;  %p1717_p0 = scmp.lt.s32.totalorder %s1708_s25, %s1708_s25 }
  0x37   : > { %p1711_p7 = pnand %p1709_p5, %p1967_p13  ;;  %p1718_p2 = por %p1717_p0, %p1716_p12 }
  0x39   : > { %p1712_p9 = pneg %p1711_p7 }
  0x3b   : > { %p1719_p1 = pnand %p1718_p2, %p1712_p9 }
  0x3d   : > { %1722 = shalt.err (!%p1719_p1)
}
  0x3e   : > { %1592 = dma.hbm_to_vmem [thread:$0]  (!%p1951_p11), %s2274_s2, 128, %s1955_s28, [#allocation6]  }
  0x3f   : > { %s1723_s24 = scalar_lea.hbm %s2275_s3, 128 }
  0x40   : > { %p1724_p6 = scmp.ne.s32.totalorder %s2275_s3, %s1723_s24  ;;  %p1730_p5 = scmp.lt.u32.totalorder %s1723_s24, %s2275_s3 }
  0x42   : > { %p1726_p10 = pnand %p1724_p6, %p1967_p13 }
  0x44   : > { %p1727_p3 = pneg %p1726_p10 }
  0x46   : > { %p1732_p7 = pnand %p1730_p5, %p1727_p3 }
  0x48   : > { %1735 = shalt.err (!%p1732_p7)
}
  0x49   : > { %s1736_s7 = scalar_lea.vmem %s180_s30, 128  ;;  %p1744_p2 = scmp.lt.s32.totalorder %s180_s30, %s180_s30 }
  0x4a   : > { %p1737_p9 = scmp.ne.s32.totalorder %s180_s30, %s1736_s7  ;;  %p1745_p1 = scmp.lt.s32.totalorder %s1736_s7, %s1736_s7 }
  0x4c   : > { %p1739_p12 = pnand %p1737_p9, %p1967_p13  ;;  %p1746_p4 = por %p1745_p1, %p1744_p2 }
  0x4e   : > { %p1740_p0 = pneg %p1739_p12 }
  0x50   : > { %p1747_p8 = pnand %p1746_p4, %p1740_p0 }
  0x52   : > { %1750 = shalt.err (!%p1747_p8)
}
  0x53   : > { %1595 = dma.hbm_to_vmem [thread:$0]  (!%p1951_p11), %s2275_s3, 128, %s180_s30, [#allocation9]  }
  0x54   : > { %s2031_s10 = sadd.s32 1, %s1855_s18   ;;  %s29_s26 = sadd.s32 1, %s1851_s17 }
  0x55   : > { %s26_s9 = ssub.s32 %s1855_s18, %s2031_s10  ;;  %p36_p8 = scmp.ne.s32.totalorder %s1851_s17, %s1847_s16 }
  0x56   : > { %p27_p4 = scmp.eq.s32.totalorder %s26_s9, 0  ;;  %p37_p13 = scmp.eq.s32.totalorder %s1855_s18, 0 }
  0x57   : > { %p1607_p6 = scmp.lt.s32.totalorder %s1855_s18, 2  ;;  %p2285_p3 = scmp.eq.s32.totalorder %s1921_s19, 1 }
  0x58   : > { %s2041_s11 = scalar_select %p27_p4, %s1851_s17, %s29_s26  }
  0x59   : > { %p38_p10 = por %p37_p13, %p36_p8  ;;  %p2045_p5 = por %p2285_p3, %p36_p8 }
  0x5a   : > { %s190_s12 = sand.u32 1, %s1851_s17   ;;  %s1431_s13 = sshll.u32 %s1855_s18, 8 }
  0x5b   : > { %s1388_s30 = sshll.u32 %s190_s12, 4  ;;  %s2054_s24 = scalar_lea.hbm %s2272_s0, %s1431_s13 }
  0x5c   : > { %s194_s27 = scalar_lea.vmem [#allocation2], %s1388_s30  ;;  %p2056_p11 = pnand %p1607_p6, %p38_p10 }
  0x5d   : > { %s202_s29 = sshll.u32 %s194_s27, 4  ;;  %s191_s6 = scalar_lea.sflag [#allocation3], %s190_s12  ;;  %s2060_s29 = int_to_ptr.vmem [resolvable:$true] %s202_s29 }
  0x5e   : > { %s1751_s7 = scalar_lea.hbm %s2054_s24, 256  ;;  %p1753_p9 = pneg %p2056_p11 }
  0x5f   : > { %p1752_p7 = scmp.ne.s32.totalorder %s2054_s24, %s1751_s7  ;;  %s1756_s9 = scalar_lea.hbm %s2272_s0, 512 }
  0x60   : > { %p1757_p2 = scmp.lt.u32.totalorder %s2054_s24, %s2272_s0  ;;  %p1758_p1 = scmp.lt.u32.totalorder %s1756_s9, %s1751_s7 }
  0x61   : > { %p1754_p12 = pnand %p1753_p9, %p1752_p7  ;;  %p1760_p8 = scmp.lt.u32.totalorder %s1751_s7, %s2054_s24 }
  0x62   : > { %p1759_p4 = por %p1758_p1, %p1757_p2 }
  0x63   : > { %p1755_p0 = pneg %p1754_p12 }
  0x64   : > { %p1761_p13 = por %p1760_p8, %p1759_p4 }
  0x66   : > { %p1762_p6 = pnand %p1761_p13, %p1755_p0 }
  0x68   : > { %1765 = shalt.err (!%p1762_p6)
}
  0x69   : > { %s1766_s12 = scalar_lea.vmem %s2060_s29, 256  ;;  %s1862_s30 = smov [#allocation2]  }
  0x6a   : > { %p1767_p10 = scmp.ne.s32.totalorder %s2060_s29, %s1766_s12  ;;  %s1771_s14 = sshll.u32 %s1862_s30, 4  ;;  %s1772_s14 = int_to_ptr.vmem [resolvable:$false] %s1771_s14 }
  0x6b   : > { %s1773_s20 = scalar_lea.vmem %s1772_s14, 512  ;;  %p1774_p12 = scmp.lt.s32.totalorder %s2060_s29, %s1772_s14 }
  0x6c   : > { %p1769_p3 = pnand %p1767_p10, %p1753_p9  ;;  %p1775_p2 = scmp.lt.s32.totalorder %s1773_s20, %s1766_s12 }
  0x6e   : > { %p1770_p7 = pneg %p1769_p3  ;;  %p1776_p1 = por %p1775_p2, %p1774_p12 }
  0x70   : > { %p1777_p4 = pnand %p1776_p1, %p1770_p7 }
  0x72   : > { %1780 = shalt.err (!%p1777_p4)
}
  0x73   : > { %1599 = dma.hbm_to_vmem [thread:$0]  (!%p2056_p11), %s2054_s24, 256, %s2060_s29, %s191_s6  }
  0x74   : > { %p2288_p0 = scmp.ne.s32.totalorder %s2282_s23, 0 }
  0x75   : > { %s2090_s27 = sand.u32 (!%p2288_p0), 1, %s1847_s16   ;;  %p2289_p9 = scmp.ne.s32.totalorder (!%p2288_p0), %s2280_s21, 0 }
  0x76   : > { %211 = sbr.rel (%p2288_p0) target bundleno = 590 (0x24e), region = 36  ;;  %s1392_s7 = sshll.u32 (!%p2288_p0), %s2090_s27, 4 }
  0x77   : > { %s214_s28 = scalar_lea.sflag (!%p2288_p0), [#allocation3], %s2090_s27  ;;  %s2094_s8 = scalar_lea.vmem (!%p2288_p0), [#allocation2], %s1392_s7 }
  0x7d   : > { %1826 = dma.done.wait (%p2289_p9), %s214_s28, 256  }
  0x7e   : > { %1828 = vsyncadd (%p2289_p9), %s214_s28, 4294967040  ;;  %p2290_p11 = scmp.eq.s32.totalorder %s1921_s19, 0 }
  0x80   : > { %1830 = dma.done.wait (%p2290_p11), [#allocation6], 704   ;;  %p2291_p8 = pmov %p2290_p11 }
  0x82   : > { %1832 = vsyncadd (%p2291_p8), [#allocation6], 4294966592  ;;  %p2292_p13 = pmov %p2291_p8 }
  0x83   : > { %p2293_p6 = pmov %p2291_p8 }
  0x84   : > { %1834 = dma.done.wait (%p2292_p13), [#allocation9], 128  }
  0x85   : > { %1836 = vsyncadd (%p2293_p6), [#allocation9], 4294967168  ;;  %v1863_v0 = vmov 0.0   ;;  %v1864_v1 = vmov 0   ;;  %vm1865_vm0 = vmmov 0   ;;  %v260_v2 = vld [vmem:[%s2094_s8 + $0x8] sm:$0xff] }
  0x86   : > { %1450 = vmatprep.subr.bf16.mxu1 %v1863_v0  ;;  %329 = vmatprep.mubr.bf16.mxu0 %v1864_v1  ;;  %v256_v3 = vld [vmem:[%s2094_s8] sm:$0xff]  ;;  %v1398_v4 = vcombine.low %v260_v2, %v260_v2  ;;  %s1866_s21 = smov 127   ;;  %v1399_v6 = vcombine.high %v260_v2, %v260_v2  ;;  %s1867_s23 = smov 126   ;;  %vm279_vm1 = vcmask 1039360   ;;  %vm287_vm2 = vcmask 1043456  }
  0x87   : > { %1452 = vmatprep.mubr.msk.bf16.mxu1 %vm1865_vm0, %v1863_v0  ;;  %1660 = vset.pattern.permute.xlu0 %v1864_v1  ;;  %v2116_v5 = vcombine.low %v256_v3, %v256_v3  ;;  %v1397_v7 = vcombine.high %v256_v3, %v256_v3  ;;  %s1868_s24 = smov 110   ;;  %s1869_s29 = smov 109   ;;  %v1244_v8 = vld [vmem:[#allocation7] sm:$0xff]  ;;  %v1253_v9 = vld [vmem:[#allocation8] sm:$0xff]  ;;  %vm283_vm3 = vcmask 64512   ;;  %vm484_vm4 = vcmask 1031168  }
  0x88   : > { %1661 = vset.pattern.permute.xlu1 %v1864_v1  ;;  %s1870_s5 = smov 108   ;;  %s1871_s6 = smov 92   ;;  %v1666_v14 = vld [vmem:[%s2094_s8 + $0x8] ss:$0 sps:$4 sm:$0xff]   ;;  %v259_v20 = vld [vmem:[#allocation5 + $0x4] sm:$0xf] }
  0x89   : > { %275 = vrot.lane.b32.xlu1 %v1398_v4, %s1866_s21  ;;  %271 = vrot.lane.b32.xlu0 %v2116_v5, %s1866_s21  ;;  %s1872_s9 = smov 91   ;;  %s1873_s26 = smov 90   ;;  %v385_v21 = vsel %vm287_vm2, %v2116_v5, 0  ;;  %v391_v22 = vsel %vm287_vm2, %v1666_v14, 0  ;;  %vm594_vm5 = vcmask 900096   ;;  %vm704_vm6 = vcmask 891904  }
  0x8a   : > { %v255_v32 = vld [vmem:[#allocation5] sm:$0xf]  ;;  %v475_v43 = vld [vmem:[#allocation5 + $0x8] sm:$0xf]  ;;  %vm814_vm7 = vcmask 883712   ;;  %vm924_vm8 = vcmask 752640  }
  0x8b   : > { %v585_v53 = vld [vmem:[#allocation5 + $0xc] sm:$0xf]  ;;  %v695_v63 = vld [vmem:[#allocation5 + $0x10] sm:$0xf]  ;;  %vm1034_vm9 = vcmask 744448   ;;  %vm1144_vm10 = vcmask 736256  }
  0x8c   : > { %s1568_s13 = smul.u32 24, %s2090_s27 }
  0x8d   : > { %277 = vrot.lane.b32.xlu1 %v1399_v6, %s1866_s21  ;;  %273 = vrot.lane.b32.xlu0 %v1397_v7, %s1866_s21  ;;  %s1569_s12 = smul.u32 384, %s1921_s19  ;;  %s1269_s19 = scalar_lea.sflag [#allocation4], %s2090_s27 }
  0x8e   : > { %s253_s30 = scalar_lea.vmem [#allocation10], %s1568_s13  ;;  %s1874_s21 = smov [#allocation10]  }
  0x8f   : > { %s1283_s14 = sshll.u32 %s253_s30, 4  ;;  %s2228_s28 = scalar_lea.hbm %s2276_s4, %s1569_s12  ;;  %s2230_s14 = int_to_ptr.vmem [resolvable:$true] %s1283_s14 }
  0x90   : > { %s1781_s8 = scalar_lea.vmem %s2230_s14, 384 }
  0x91   : > { %476 = vrot.lane.b32.xlu0 %v2116_v5, %s1867_s23  ;;  %478 = vrot.lane.b32.xlu1 %v1397_v7, %s1867_s23  ;;  %p1782_p10 = scmp.ne.s32.totalorder %s2230_s14, %s1781_s8 }
  0x93   : > { %p1783_p3 = pnand %p1782_p10, %p2045_p5 }
  0x95   : > { %480 = vrot.lane.b32.xlu0 %v1398_v4, %s1867_s23  ;;  %482 = vrot.lane.b32.xlu1 %v1399_v6, %s1867_s23  ;;  %p1784_p7 = pneg %p1783_p3  ;;  %s1785_s23 = sshll.u32 %s1874_s21, 4  ;;  %s1786_s23 = int_to_ptr.vmem [resolvable:$false] %s1785_s23 }
  0x96   : > { %p1788_p12 = scmp.lt.s32.totalorder %s2230_s14, %s1786_s23 }
  0x99   : > { %586 = vrot.lane.b32.xlu0 %v2116_v5, %s1868_s24  ;;  %588 = vrot.lane.b32.xlu1 %v1397_v7, %s1868_s24 }
  0x9d   : > { %590 = vrot.lane.b32.xlu0 %v1398_v4, %s1868_s24  ;;  %592 = vrot.lane.b32.xlu1 %v1399_v6, %s1868_s24  ;;  %s1787_s24 = scalar_lea.vmem %s1786_s23, 768 }
  0x9e   : > { %p1789_p2 = scmp.lt.s32.totalorder %s1787_s24, %s1781_s8 }
  0xa0   : > { %p1790_p1 = por %p1789_p2, %p1788_p12 }
  0xa1   : > { %696 = vrot.lane.b32.xlu0 %v2116_v5, %s1869_s29  ;;  %698 = vrot.lane.b32.xlu1 %v1397_v7, %s1869_s29 }
  0xa2   : > { %p1791_p4 = pnand %p1790_p1, %p1784_p7 }
  0xa5   : > { %700 = vrot.lane.b32.xlu0 %v1398_v4, %s1869_s29  ;;  %702 = vrot.lane.b32.xlu1 %v1399_v6, %s1869_s29 }
  0xa9   : > { %806 = vrot.lane.b32.xlu0 %v2116_v5, %s1870_s5  ;;  %808 = vrot.lane.b32.xlu1 %v1397_v7, %s1870_s5 }
  0xad   : > { %810 = vrot.lane.b32.xlu0 %v1398_v4, %s1870_s5  ;;  %812 = vrot.lane.b32.xlu1 %v1399_v6, %s1870_s5 }
  0xb1   : > { %916 = vrot.lane.b32.xlu0 %v2116_v5, %s1871_s6  ;;  %918 = vrot.lane.b32.xlu1 %v1397_v7, %s1871_s6 }
  0xb5   : > { %920 = vrot.lane.b32.xlu0 %v1398_v4, %s1871_s6  ;;  %922 = vrot.lane.b32.xlu1 %v1399_v6, %s1871_s6 }
  0xb9   : > { %1026 = vrot.lane.b32.xlu0 %v2116_v5, %s1872_s9  ;;  %1028 = vrot.lane.b32.xlu1 %v1397_v7, %s1872_s9 }
  0xbd   : > { %1030 = vrot.lane.b32.xlu0 %v1398_v4, %s1872_s9  ;;  %1032 = vrot.lane.b32.xlu1 %v1399_v6, %s1872_s9 }
  0xc1   : > { %1136 = vrot.lane.b32.xlu0 %v2116_v5, %s1873_s26  ;;  %1138 = vrot.lane.b32.xlu1 %v1397_v7, %s1873_s26 }
  0xc5   : > { %1140 = vrot.lane.b32.xlu0 %v1398_v4, %s1873_s26  ;;  %1142 = vrot.lane.b32.xlu1 %v1399_v6, %s1873_s26 }
  0xc9   : > { %1247 = vperm.xlu0 %1660, %v1244_v8   ;;  %1256 = vperm.xlu1 %1661, %v1253_v9  }
  0xfb   : > { %v276_v10 = vpop.permute.xlu1 %275  ;;  %v272_v11 = vpop.permute.xlu0 %271 }
  0xff   : > { %v278_v12 = vpop.permute.xlu1 %277  ;;  %v274_v13 = vpop.permute.xlu0 %273 }
 0x100   : > { %v281_v15 = vsel %vm279_vm1, %v274_v13, %v276_v10  ;;  %v280_v16 = vsel %vm279_vm1, %v272_v11, %v274_v13  ;;  %v282_v17 = vsel %vm279_vm1, %v276_v10, %v278_v12  ;;  %v805_v11 = vld [vmem:[#allocation5 + $0x14] sm:$0xf] }
 0x101   : > { %1400 = vmatprep.subr.msk.bf16.mxu0 %vm287_vm2, %v281_v15  ;;  %v289_v18 = vsel %vm287_vm2, %v280_v16, 0  ;;  %v295_v19 = vsel %vm287_vm2, %v282_v17, 0 }
 0x102   : > { %298 = vmatpush1.bf16.msra.mxu0 %v289_v18  ;;  %1451 = vmatpush3.bf16.msra.mxu1 %v295_v19 }
 0x103   : > { %1404 = vmatprep.subr.msk.bf16.mxu0 %vm287_vm2, %v1397_v7  ;;  %1456 = vmatprep.subr.bf16.mxu1 %v1863_v0  ;;  %v477_v23 = vpop.permute.xlu0 %476  ;;  %v479_v24 = vpop.permute.xlu1 %478 }
 0x104   : > { %v485_v29 = vsel %vm484_vm4, %v477_v23, %v479_v24 }
 0x105   : > { %1401 = vmatmul.mubr.msk.bf16.vlgmr.msra.gmra.mrb[0].mxu0 %vm283_vm3, %v259_v20  ;;  %1453 = vmatmul.mubr.msk.bf16.vlgmr.msra.gmra.mrb[0].mxu1 %vm283_vm3, %v259_v20  ;;  %v492_v33 = vsel %vm287_vm2, %v485_v29, 0 }
 0x106   : > { %394 = vmatpush1.bf16.msra.mxu0 %v385_v21  ;;  %1457 = vmatpush3.bf16.msra.mxu1 %v391_v22  ;;  %v915_v21 = vld [vmem:[#allocation5 + $0x18] sm:$0xf] }
 0x107   : > { %v481_v25 = vpop.permute.xlu0 %480  ;;  %425 = vmatprep.mubr.bf16.mxu0 %v1864_v1  ;;  %1458 = vmatprep.mubr.msk.bf16.mxu1 %vm1865_vm0, %v1863_v0  ;;  %v483_v27 = vpop.permute.xlu1 %482 }
 0x108   : > { %v486_v26 = vsel %vm484_vm4, %v479_v24, %v481_v25  ;;  %1462 = vmatprep.subr.bf16.mxu1 %v1863_v0  ;;  %v487_v30 = vsel %vm484_vm4, %v481_v25, %v483_v27 }
 0x109   : > { %1407 = vmatprep.subr.msk.bf16.mxu0 %vm287_vm2, %v486_v26  ;;  %v498_v34 = vsel %vm287_vm2, %v487_v30, 0 }
 0x10b   : > { %v587_v28 = vpop.permute.xlu0 %586  ;;  %v589_v31 = vpop.permute.xlu1 %588 }
 0x10c   : > { %v595_v39 = vsel %vm594_vm5, %v587_v28, %v589_v31  ;;  %v1025_v28 = vld [vmem:[#allocation5 + $0x1c] sm:$0xf] }
 0x10d   : > { %v602_v44 = vsel %vm287_vm2, %v595_v39, 0 }
 0x10f   : > { %v591_v35 = vpop.permute.xlu0 %590  ;;  %v593_v38 = vpop.permute.xlu1 %592 }
 0x110   : > { %v596_v36 = vsel %vm594_vm5, %v589_v31, %v591_v35  ;;  %v597_v40 = vsel %vm594_vm5, %v591_v35, %v593_v38  ;;  %v1135_v31 = vld [vmem:[#allocation5 + $0x20] sm:$0xf] }
 0x111   : > { %1405 = vmatmul.mubr.msk.bf16.vlgmr.msra.gmra.mrb[0].mxu0 %vm283_vm3, %v255_v32  ;;  %1459 = vmatmul.mubr.msk.bf16.vlgmr.msra.gmra.mrb[0].mxu1 %vm283_vm3, %v255_v32  ;;  %v608_v45 = vsel %vm287_vm2, %v597_v40, 0 }
 0x112   : > { %501 = vmatpush1.bf16.msra.mxu0 %v492_v33  ;;  %1463 = vmatpush3.bf16.msra.mxu1 %v498_v34 }
 0x113   : > { %1410 = vmatprep.subr.msk.bf16.mxu0 %vm287_vm2, %v596_v36  ;;  %532 = vmatprep.mubr.bf16.mxu0 %v1864_v1  ;;  %v697_v37 = vpop.permute.xlu0 %696  ;;  %v699_v41 = vpop.permute.xlu1 %698 }
 0x114   : > { %1464 = vmatprep.mubr.msk.bf16.mxu1 %vm1865_vm0, %v1863_v0  ;;  %1468 = vmatprep.subr.bf16.mxu1 %v1863_v0  ;;  %v705_v49 = vsel %vm704_vm6, %v697_v37, %v699_v41 }
 0x115   : > { %v712_v54 = vsel %vm287_vm2, %v705_v49, 0 }
 0x117   : > { %v701_v42 = vpop.permute.xlu0 %700  ;;  %v703_v48 = vpop.permute.xlu1 %702 }
 0x118   : > { %v706_v46 = vsel %vm704_vm6, %v699_v41, %v701_v42  ;;  %v707_v50 = vsel %vm704_vm6, %v701_v42, %v703_v48 }
 0x119   : > { %v718_v55 = vsel %vm287_vm2, %v707_v50, 0 }
 0x11b   : > { %v807_v47 = vpop.permute.xlu0 %806  ;;  %v809_v51 = vpop.permute.xlu1 %808 }
 0x11c   : > { %v815_v59 = vsel %vm814_vm7, %v807_v47, %v809_v51 }
 0x11d   : > { %1408 = vmatmul.mubr.msk.bf16.vlgmr.msra.gmra.mrb[0].mxu0 %vm283_vm3, %v475_v43  ;;  %1465 = vmatmul.mubr.msk.bf16.vlgmr.msra.gmra.mrb[0].mxu1 %vm283_vm3, %v475_v43  ;;  %v822_v2 = vsel %vm287_vm2, %v815_v59, 0 }
 0x11e   : > { %611 = vmatpush1.bf16.msra.mxu0 %v602_v44  ;;  %1469 = vmatpush3.bf16.msra.mxu1 %v608_v45 }
 0x11f   : > { %1413 = vmatprep.subr.msk.bf16.mxu0 %vm287_vm2, %v706_v46  ;;  %642 = vmatprep.mubr.bf16.mxu0 %v1864_v1  ;;  %v811_v52 = vpop.permute.xlu0 %810  ;;  %v813_v58 = vpop.permute.xlu1 %812 }
 0x120   : > { %1470 = vmatprep.mubr.msk.bf16.mxu1 %vm1865_vm0, %v1863_v0  ;;  %1474 = vmatprep.subr.bf16.mxu1 %v1863_v0  ;;  %v816_v56 = vsel %vm814_vm7, %v809_v51, %v811_v52  ;;  %v817_v60 = vsel %vm814_vm7, %v811_v52, %v813_v58 }
 0x121   : > { %v828_v3 = vsel %vm287_vm2, %v817_v60, 0 }
 0x123   : > { %v917_v57 = vpop.permute.xlu0 %916  ;;  %v919_v61 = vpop.permute.xlu1 %918 }
 0x124   : > { %v925_v7 = vsel %vm924_vm8, %v917_v57, %v919_v61 }
 0x125   : > { %v932_v12 = vsel %vm287_vm2, %v925_v7, 0 }
 0x127   : > { %v921_v62 = vpop.permute.xlu0 %920  ;;  %v923_v6 = vpop.permute.xlu1 %922 }
 0x128   : > { %v926_v4 = vsel %vm924_vm8, %v919_v61, %v921_v62  ;;  %v927_v8 = vsel %vm924_vm8, %v921_v62, %v923_v6 }
 0x129   : > { %1411 = vmatmul.mubr.msk.bf16.vlgmr.msra.gmra.mrb[0].mxu0 %vm283_vm3, %v585_v53  ;;  %1471 = vmatmul.mubr.msk.bf16.vlgmr.msra.gmra.mrb[0].mxu1 %vm283_vm3, %v585_v53  ;;  %v938_v13 = vsel %vm287_vm2, %v927_v8, 0 }
 0x12a   : > { %721 = vmatpush1.bf16.msra.mxu0 %v712_v54  ;;  %1475 = vmatpush3.bf16.msra.mxu1 %v718_v55 }
 0x12b   : > { %1416 = vmatprep.subr.msk.bf16.mxu0 %vm287_vm2, %v816_v56  ;;  %752 = vmatprep.mubr.bf16.mxu0 %v1864_v1  ;;  %v1027_v5 = vpop.permute.xlu0 %1026  ;;  %v1029_v9 = vpop.permute.xlu1 %1028 }
 0x12c   : > { %1476 = vmatprep.mubr.msk.bf16.mxu1 %vm1865_vm0, %v1863_v0  ;;  %1480 = vmatprep.subr.bf16.mxu1 %v1863_v0  ;;  %v1035_v17 = vsel %vm1034_vm9, %v1027_v5, %v1029_v9 }
 0x12d   : > { %v1042_v22 = vsel %vm287_vm2, %v1035_v17, 0 }
 0x12f   : > { %v1031_v10 = vpop.permute.xlu0 %1030  ;;  %v1033_v16 = vpop.permute.xlu1 %1032 }
 0x130   : > { %v1036_v14 = vsel %vm1034_vm9, %v1029_v9, %v1031_v10  ;;  %v1037_v18 = vsel %vm1034_vm9, %v1031_v10, %v1033_v16 }
 0x131   : > { %v1048_v23 = vsel %vm287_vm2, %v1037_v18, 0 }
 0x133   : > { %v1137_v15 = vpop.permute.xlu0 %1136  ;;  %v1139_v19 = vpop.permute.xlu1 %1138 }
 0x134   : > { %v1145_v26 = vsel %vm1144_vm10, %v1137_v15, %v1139_v19 }
 0x135   : > { %1414 = vmatmul.mubr.msk.bf16.vlgmr.msra.gmra.mrb[0].mxu0 %vm283_vm3, %v695_v63  ;;  %1477 = vmatmul.mubr.msk.bf16.vlgmr.msra.gmra.mrb[0].mxu1 %vm283_vm3, %v695_v63  ;;  %v1152_v29 = vsel %vm287_vm2, %v1145_v26, 0 }
 0x136   : > { %831 = vmatpush1.bf16.msra.mxu0 %v822_v2  ;;  %1481 = vmatpush3.bf16.msra.mxu1 %v828_v3 }
 0x137   : > { %1419 = vmatprep.subr.msk.bf16.mxu0 %vm287_vm2, %v926_v4  ;;  %862 = vmatprep.mubr.bf16.mxu0 %v1864_v1  ;;  %v1141_v20 = vpop.permute.xlu0 %1140  ;;  %v1143_v25 = vpop.permute.xlu1 %1142 }
 0x138   : > { %1482 = vmatprep.mubr.msk.bf16.mxu1 %vm1865_vm0, %v1863_v0  ;;  %1486 = vmatprep.subr.bf16.mxu1 %v1863_v0  ;;  %v1146_v24 = vsel %vm1144_vm10, %v1139_v19, %v1141_v20  ;;  %v1147_v27 = vsel %vm1144_vm10, %v1141_v20, %v1143_v25 }
 0x139   : > { %v1158_v30 = vsel %vm287_vm2, %v1147_v27, 0 }
 0x141   : > { %1417 = vmatmul.mubr.msk.bf16.vlgmr.msra.gmra.mrb[0].mxu0 %vm283_vm3, %v805_v11  ;;  %1483 = vmatmul.mubr.msk.bf16.vlgmr.msra.gmra.mrb[0].mxu1 %vm283_vm3, %v805_v11 }
 0x142   : > { %941 = vmatpush1.bf16.msra.mxu0 %v932_v12  ;;  %1487 = vmatpush3.bf16.msra.mxu1 %v938_v13 }
 0x143   : > { %1422 = vmatprep.subr.msk.bf16.mxu0 %vm287_vm2, %v1036_v14  ;;  %972 = vmatprep.mubr.bf16.mxu0 %v1864_v1 }
 0x144   : > { %1488 = vmatprep.mubr.msk.bf16.mxu1 %vm1865_vm0, %v1863_v0  ;;  %1492 = vmatprep.subr.bf16.mxu1 %v1863_v0 }
 0x148   : > { %v1248_v32 = vpop.permute.xlu0 %1247  ;;  %v1257_v33 = vpop.permute.xlu1 %1256 }
 0x14d   : > { %1420 = vmatmul.mubr.msk.bf16.vlgmr.msra.gmra.mrb[0].mxu0 %vm283_vm3, %v915_v21  ;;  %1489 = vmatmul.mubr.msk.bf16.vlgmr.msra.gmra.mrb[0].mxu1 %vm283_vm3, %v915_v21 }
 0x14e   : > { %1051 = vmatpush1.bf16.msra.mxu0 %v1042_v22  ;;  %1493 = vmatpush3.bf16.msra.mxu1 %v1048_v23 }
 0x14f   : > { %1425 = vmatprep.subr.msk.bf16.mxu0 %vm287_vm2, %v1146_v24  ;;  %1082 = vmatprep.mubr.bf16.mxu0 %v1864_v1 }
 0x150   : > { %1494 = vmatprep.mubr.msk.bf16.mxu1 %vm1865_vm0, %v1863_v0  ;;  %1498 = vmatprep.subr.bf16.mxu1 %v1863_v0 }
 0x159   : > { %1423 = vmatmul.mubr.msk.bf16.vlgmr.msra.gmra.mrb[0].mxu0 %vm283_vm3, %v1025_v28  ;;  %1495 = vmatmul.mubr.msk.bf16.vlgmr.msra.gmra.mrb[0].mxu1 %vm283_vm3, %v1025_v28 }
 0x15a   : > { %1161 = vmatpush1.bf16.msra.mxu0 %v1152_v29  ;;  %1499 = vmatpush3.bf16.msra.mxu1 %v1158_v30 }
 0x15b   : > { %1192 = vmatprep.mubr.bf16.mxu0 %v1864_v1  ;;  %1500 = vmatprep.mubr.msk.bf16.mxu1 %vm1865_vm0, %v1863_v0 }
 0x165   : > { %1426 = vmatmul.mubr.msk.bf16.vlgmr.msra.gmra.mrb[0].mxu0 %vm283_vm3, %v1135_v31  ;;  %1501 = vmatmul.mubr.msk.bf16.vlgmr.msra.gmra.mrb[0].mxu1 %vm283_vm3, %v1135_v31 }
 0x238   : > { %v1194_v34 = vpop.f32.mrb[0].mxu0  ;;  %v1235_v35 = vpop.f32.mrb[0].mxu1 }
 0x239   : > { %v1250_v36 = vmul.f32 %v1248_v32, %v1194_v34  ;;  %v1252_v37 = vmul.f32 %v1248_v32, %v1235_v35  ;;  %v1196_v38 = vpop.f32.mrb[1].mxu0  ;;  %v1502_v39 = vpop.f32.mrb[1].mxu1 }
 0x23a   : > { %v1251_v40 = vmul.f32 %v1248_v32, %v1196_v38  ;;  %v1198_v1 = vpop.f32.mrb[2].mxu0  ;;  %v1238_v41 = vpop.f32.mrb[2].mxu1 }
 0x23b   : > { %v1259_v0 = vadd.f32 %v1257_v33, %v1250_v36  ;;  %v1261_v42 = vadd.f32 %v1257_v33, %v1252_v37  ;;  %v1199_v43 = vpop.f32.mrb[3].mxu0  ;;  %v1503_v44 = vpop.f32.mrb[3].mxu1 }
 0x23c   : > { %v1260_v45 = vadd.f32 %v1257_v33, %v1251_v40 }
 0x23d   : > { %v1262_v46 = vmax.f32 %v1259_v0, 0.0  ;;  %v1264_v47 = vmax.f32 %v1261_v42, 0.0 }
 0x23e   : > { %v1263_v48 = vmax.f32 %v1260_v45, 0.0 }
 0x23f   : > { %1265 = vst [vmem:[%s253_s30] sm:$0xff] %v1262_v46  ;;  %1267 = vst [vmem:[%s253_s30 + $0x10] sm:$0xff] %v1264_v47 }
 0x240   : > { %1266 = vst [vmem:[%s253_s30 + $0x8] sm:$0xff] %v1263_v48 }
 0x241   : > { %1794 = shalt.err (!%p1791_p4)
}
 0x242   : > { %s1795_s27 = scalar_lea.hbm %s2228_s28, 384  ;;  %s1799_s6 = scalar_lea.hbm %s2276_s4, 768 }
 0x243   : > { %p1796_p0 = scmp.ne.s32.totalorder %s2228_s28, %s1795_s27  ;;  %p1800_p8 = scmp.lt.u32.totalorder %s2228_s28, %s2276_s4 }
 0x244   : > { %p1801_p13 = scmp.lt.u32.totalorder %s1799_s6, %s1795_s27  ;;  %p1803_p10 = scmp.lt.u32.totalorder %s1795_s27, %s2228_s28 }
 0x245   : > { %p1797_p9 = pnand %p1796_p0, %p2045_p5 }
 0x246   : > { %p1802_p6 = por %p1801_p13, %p1800_p8 }
 0x247   : > { %p1798_p11 = pneg %p1797_p9 }
 0x248   : > { %p1804_p3 = por %p1803_p10, %p1802_p6 }
 0x24a   : > { %p1805_p7 = pnand %p1804_p3, %p1798_p11 }
 0x24c   : > { %1808 = shalt.err (!%p1805_p7)
}
 0x24d   : > { %1584 = dma.vmem_to_hbm [thread:$0]  (%p2045_p5), %s2230_s14, 384, %s2228_s28, %s1269_s19  }
 0x24e PF: > { %s1295_s13 = sand.u32 1, %s1843_s15   ;;  %p2294_p12 = scmp.ne.s32.totalorder %s2281_s22, 0 }
 0x24f   : > { %p2295_p2 = scmp.ge.s32.totalorder %s1855_s18, 2  ;;  %s1296_s12 = scalar_lea.sflag [#allocation4], %s1295_s13 }
 0x251   : > { %p1601_p1 = pnand %p2295_p2, %p2294_p12 }
 0x253   : > { %1838 = dma.done.wait (!%p1601_p1), %s1296_s12, 384  }
 0x254   : > { %1840 = vsyncadd (!%p1601_p1), %s1296_s12, 4294966912  ;;  %p19_p4 = scmp.ge.s32.totalorder %s2031_s10, 4   ;;  %s2296_s15 = smov %s1847_s16 }
 0x255   : > { %s2297_s16 = smov %s1851_s17  ;;  %s2298_s17 = smov %s2041_s11 }
 0x256   : > { %s2299_s18 = smov %s2031_s10  ;;  %21 = sbr.rel (!%p19_p4) target bundleno = 7 (0x7), region = 101 }
 0x25d   :  { %1301 = vsyncpa [#allocation3], 1 }
 0x25e   :  { %1303 = vsyncpa [#allocation3 + $0x1], 1 }
 0x25f   :  { %1304 = vsyncpa [#allocation6], 1 }
 0x260   :  { %1305 = vsyncpa [#allocation9], 1 }
 0x261   :  { %1306 = vsyncpa [#allocation4], 1 }
 0x262   :  { %1308 = vsyncpa [#allocation4 + $0x1], 1 }

</bundles_post_ra>
